<compile_context>
chip_gen: v7x
topology: tpu7x:2x2x1
jax: 0.10.0
libtpu: 0.0.40
codegen_flags: <defaults>
</compile_context>

<pallas_src>
import jax
import jax.numpy as jnp
from jax.experimental import pallas as pl
from jax.experimental.pallas import tpu as pltpu

# Small, hardware-friendly stand-ins for the original sizes
N = 16          # batch                (any)
BT = 8          # batch tile           (multiple of 8; N/BT >= 2 keeps both v7x TCs busy)
BLOCK = 16      # block_num            (196 in original)
WORD = 8        # word_num             (22)
IMG_SIZE = 128  # img_size             (1024)
VOCAB = 100     # vocab_size           (15881)
EMBED = 128     # embed_size           (512)
OUT = 128       # output_size          (3000)


def coatten_kernel(img_ref, que_ref,
                   w_ie_ref, b_ie_ref,
                   w_imgf_ref, b_imgf_ref,
                   w_quef_ref, b_quef_ref,
                   w_hv_ref, w_hq_ref,
                   b_hv_ref, b_hq_ref,
                   v_ref, q_ref, av_ref, aq_ref):
    bt = img_ref.shape[0]

    # ---- image embedding: img = relu(img_emb(img_features))   (dropout == identity) ----
    # Flatten batch tile into the MXU M dim; BLOCK=16 is a bf16 sublane multiple, so the
    # reshape is layout-preserving.
    img_flat = img_ref[...].reshape(bt * BLOCK, IMG_SIZE)              # bf16 (bt*BLOCK, I)
    img_e = jnp.dot(img_flat, w_ie_ref[...],
                    preferred_element_type=jnp.float32) + b_ie_ref[...]
    img_e = jnp.maximum(img_e, 0.0)                                    # f32 (bt*BLOCK, E)
    img_bf = img_e.astype(jnp.bfloat16)

    # ---- question embeddings (gathered in bf16 in the wrapper) ----
    # Upcast to f32 first: WORD=8 is the f32 sublane multiple, so the flatten reshape is
    # free; the f32 3-D copy is also what the weighted q-sum needs at the end.
    que_f32 = que_ref[...].astype(jnp.float32)                         # (bt, WORD, E)
    que_flat = que_f32.reshape(bt * WORD, EMBED).astype(jnp.bfloat16)  # bf16 (bt*WORD, E)

    # ---- fused projections: one MXU pass per operand, 2*EMBED-wide output ----
    # image path -> [Cv | img_].   NOTE: Cv really uses fc_Wbv (as in the reference).
    img_proj = jnp.dot(img_bf, w_imgf_ref[...],
                       preferred_element_type=jnp.float32) + b_imgf_ref[...]
    Cv_bf = img_proj[:, :EMBED].astype(jnp.bfloat16).reshape(bt, BLOCK, EMBED)
    img_p = img_proj[:, EMBED:].reshape(bt, BLOCK, EMBED)              # f32
    # question path -> [Cq | que_].  NOTE: Cq ALSO uses fc_Wbv (the reference's bug).
    que_proj = jnp.dot(que_flat, w_quef_ref[...],
                       preferred_element_type=jnp.float32) + b_quef_ref[...]
    Cq_bf = que_proj[:, :EMBED].astype(jnp.bfloat16).reshape(bt, WORD, EMBED)
    que_p = que_proj[:, EMBED:].reshape(bt, WORD, EMBED)               # f32

    # ---- affinity, computed (and tanh'ed) exactly once ----
    # C[b,w,k] = tanh(sum_e Cq[b,w,e] * Cv[b,k,e])
    C = jnp.tanh(jnp.einsum('bwe,bke->bwk', Cq_bf, Cv_bf,
                            preferred_element_type=jnp.float32))       # (bt, WORD, BLOCK)
    C_bf = C.astype(jnp.bfloat16)
    img_p_bf = img_p.astype(jnp.bfloat16)
    que_p_bf = que_p.astype(jnp.bfloat16)

    w_hv = w_hv_ref[...].reshape(1, 1, EMBED)
    w_hq = w_hq_ref[...].reshape(1, 1, EMBED)

    # ---- image attention path first (v/av finished before Hq -> smaller live set) ----
    # Hv[b,k,e] = tanh(img_[b,k,e] + sum_w C[b,w,k] * que_[b,w,e])
    Hv = jnp.tanh(img_p + jnp.einsum('bwk,bwe->bke', C_bf, que_p_bf,
                                     preferred_element_type=jnp.float32))
    # Rank-1 head on the VPU: multiply by the (1,E) weight row + lane reduce; scalar
    # bias from SMEM (a (1,1) VMEM value would waste a whole (8,128) tile).
    logit_v = jnp.sum(Hv * w_hv, axis=-1) + b_hv_ref[0, 0]             # (bt, BLOCK)
    av = jax.nn.softmax(logit_v, axis=-1)                              # softmax over BLOCK
    img_e3 = img_e.reshape(bt, BLOCK, EMBED)                           # f32
    v_ref[...] = jnp.sum(av[:, :, None] * img_e3, axis=1)              # (bt, EMBED)
    av_ref[...] = av

    # ---- question attention path ----
    # Hq[b,w,e] = tanh(que_[b,w,e] + sum_k C[b,w,k] * img_[b,k,e])
    Hq = jnp.tanh(que_p + jnp.einsum('bwk,bke->bwe', C_bf, img_p_bf,
                                     preferred_element_type=jnp.float32))
    logit_q = jnp.sum(Hq * w_hq, axis=-1) + b_hq_ref[0, 0]             # (bt, WORD)
    aq = jax.nn.softmax(logit_q, axis=-1)                              # softmax over WORD
    q_ref[...] = jnp.sum(aq[:, :, None] * que_f32, axis=1)             # (bt, EMBED)
    aq_ref[...] = aq


def hie_co_atten(img_features, que_features, params, *, batch_tile=BT):
    n = img_features.shape[0]
    assert n % batch_tile == 0
    # batch_tile tuning: v5e/v6e (128 MiB VMEM) can push this much higher at real sizes;
    # v7x (64 MiB, 2 TCs) should keep n // batch_tile even and >= 2.

    # One-time casts / fusions (not per grid step).
    img_bf16 = img_features.astype(jnp.bfloat16)
    w_ie = params["w_ie"].astype(jnp.bfloat16)
    # Fused shared-operand projections.  The question half uses fc_Wbv on purpose
    # (faithful to the reference bug); fc_Wbq is never used.
    w_imgf = jnp.concatenate([params["w_bv"], params["w_v"]], axis=1).astype(jnp.bfloat16)
    b_imgf = jnp.concatenate([params["b_bv"], params["b_v"]], axis=1)
    w_quef = jnp.concatenate([params["w_bv"], params["w_q"]], axis=1).astype(jnp.bfloat16)
    b_quef = jnp.concatenate([params["b_bv"], params["b_q"]], axis=1)

    # Embedding lookup (gather) -- plain JAX glue, done in bf16 to halve the que DMA.
    que = params["emb_table"].astype(jnp.bfloat16)[que_features]       # (N, WORD, E) bf16

    batch3 = lambda b: (b, 0, 0)
    full2 = lambda b: (0, 0)
    row = lambda b: (b, 0)

    in_specs = [
        pl.BlockSpec((batch_tile, BLOCK, IMG_SIZE), batch3),           # img (bf16)
        pl.BlockSpec((batch_tile, WORD, EMBED), batch3),               # que (bf16)
        pl.BlockSpec((IMG_SIZE, EMBED), full2), pl.BlockSpec((1, EMBED), full2),          # img_emb
        pl.BlockSpec((EMBED, 2 * EMBED), full2), pl.BlockSpec((1, 2 * EMBED), full2),     # [Wbv|Wv]
        pl.BlockSpec((EMBED, 2 * EMBED), full2), pl.BlockSpec((1, 2 * EMBED), full2),     # [Wbv|Wq]
        pl.BlockSpec((1, EMBED), full2),                               # fc_Whv weight row
        pl.BlockSpec((1, EMBED), full2),                               # fc_Whq weight row
        pl.BlockSpec(memory_space=pltpu.MemorySpace.SMEM),             # fc_Whv bias (1,1)
        pl.BlockSpec(memory_space=pltpu.MemorySpace.SMEM),             # fc_Whq bias (1,1)
    ]
    out_specs = [
        pl.BlockSpec((batch_tile, EMBED), row),                        # v  (lane-dense)
        pl.BlockSpec((batch_tile, EMBED), row),                        # q  (lane-dense)
        pl.BlockSpec((batch_tile, BLOCK), row),                        # av (tiny, low prio)
        pl.BlockSpec((batch_tile, WORD), row),                         # aq (tiny, low prio)
    ]
    out_shapes = (
        jax.ShapeDtypeStruct((n, EMBED), jnp.float32),
        jax.ShapeDtypeStruct((n, EMBED), jnp.float32),
        jax.ShapeDtypeStruct((n, BLOCK), jnp.float32),
        jax.ShapeDtypeStruct((n, WORD), jnp.float32),
    )

    v, q, av, aq = pl.pallas_call(
        coatten_kernel,
        out_shape=out_shapes,
        grid=(n // batch_tile,),
        in_specs=in_specs,
        out_specs=out_specs,
        # Per-step footprint here is <2 MiB, well inside every generation's default
        # scoped VMEM, so no explicit vmem_limit_bytes; re-derive it (and batch_tile)
        # from the real-size footprint per generation (v7x: 64 MiB physical).
        compiler_params=pltpu.CompilerParams(
            dimension_semantics=("parallel",)),
    )(img_bf16, que,
      w_ie, params["b_ie"],
      w_imgf, b_imgf, w_quef, b_quef,
      params["w_hv_row"], params["w_hq_row"],
      params["b_hv"], params["b_hq"])

    # Reproduce torch.cat((v, q), 0).view(batch_size, -1) exactly (mixes batch rows).
    vq = jnp.concatenate([v, q], axis=0).reshape(n, 2 * EMBED)

    # Final fc: trivial (N, 2E) @ (2E, OUT) matmul -> plain XLA (a separate pallas_call
    # would be pure overhead).
    x = jnp.dot(vq.astype(jnp.bfloat16), params["w_fc"].astype(jnp.bfloat16),
                preferred_element_type=jnp.float32) + params["b_fc"]
    return x, av, aq


def hie_co_atten_ref(img_features, que_features, params):
    """Pure-JAX f32 reference with identical (bug-faithful) semantics."""
    n = img_features.shape[0]
    img = jnp.maximum(jnp.einsum('nki,ie->nke', img_features, params["w_ie"])
                      + params["b_ie"], 0.0)
    que = params["emb_table"][que_features]
    Cv = jnp.einsum('nke,ef->nkf', img, params["w_bv"]) + params["b_bv"]
    Cq = jnp.einsum('nwe,ef->nwf', que, params["w_bv"]) + params["b_bv"]   # Wbv on purpose
    C = jnp.tanh(jnp.einsum('nwe,nke->nwk', Cq, Cv))
    img_p = jnp.einsum('nke,ef->nkf', img, params["w_v"]) + params["b_v"]
    que_p = jnp.einsum('nwe,ef->nwf', que, params["w_q"]) + params["b_q"]
    Hv = jnp.tanh(img_p + jnp.einsum('nwk,nwe->nke', C, que_p))
    Hq = jnp.tanh(que_p + jnp.einsum('nwk,nke->nwe', C, img_p))
    av = jax.nn.softmax(jnp.einsum('nke,e->nk', Hv, params["w_hv_row"][0]) + params["b_hv"][0, 0], axis=-1)
    aq = jax.nn.softmax(jnp.einsum('nwe,e->nw', Hq, params["w_hq_row"][0]) + params["b_hq"][0, 0], axis=-1)
    v = jnp.einsum('nk,nke->ne', av, img)
    q = jnp.einsum('nw,nwe->ne', aq, que)
    vq = jnp.concatenate([v, q], axis=0).reshape(n, 2 * EMBED)
    x = vq @ params["w_fc"] + params["b_fc"]
    return x, av, aq


if __name__ == "__main__":
    key = jax.random.PRNGKey(0)
    ks = jax.random.split(key, 20)
    s = 0.05

    params = {
        "emb_table": s * jax.random.normal(ks[0], (VOCAB, EMBED), jnp.float32),
        "w_ie": s * jax.random.normal(ks[1], (IMG_SIZE, EMBED), jnp.float32),
        "b_ie": s * jax.random.normal(ks[2], (1, EMBED), jnp.float32),
        "w_bv": s * jax.random.normal(ks[3], (EMBED, EMBED), jnp.float32),
        "b_bv": s * jax.random.normal(ks[4], (1, EMBED), jnp.float32),
        "w_v": s * jax.random.normal(ks[5], (EMBED, EMBED), jnp.float32),
        "b_v": s * jax.random.normal(ks[6], (1, EMBED), jnp.float32),
        "w_q": s * jax.random.normal(ks[7], (EMBED, EMBED), jnp.float32),
        "b_q": s * jax.random.normal(ks[8], (1, EMBED), jnp.float32),
        "w_hv_row": s * jax.random.normal(ks[9], (1, EMBED), jnp.float32),
        "b_hv": s * jax.random.normal(ks[10], (1, 1), jnp.float32),
        "w_hq_row": s * jax.random.normal(ks[11], (1, EMBED), jnp.float32),
        "b_hq": s * jax.random.normal(ks[12], (1, 1), jnp.float32),
        "w_fc": s * jax.random.normal(ks[13], (2 * EMBED, OUT), jnp.float32),
        "b_fc": s * jax.random.normal(ks[14], (1, OUT), jnp.float32),
    }

    img_features = jax.random.normal(ks[15], (N, BLOCK, IMG_SIZE), jnp.float32)
    que_features = jax.random.randint(ks[16], (N, WORD), 0, VOCAB, dtype=jnp.int32)

    x, av, aq = hie_co_atten(img_features, que_features, params)
    jax.block_until_ready((x, av, aq))

    assert x.shape == (N, OUT)
    assert av.shape == (N, BLOCK)
    assert aq.shape == (N, WORD)
    assert bool(jnp.all(jnp.isfinite(x)))
    # attention rows are softmax distributions
    assert bool(jnp.allclose(jnp.sum(av, axis=-1), 1.0, atol=1e-3))
    assert bool(jnp.allclose(jnp.sum(aq, axis=-1), 1.0, atol=1e-3))

    # compare against the f32 pure-JAX reference (loose tolerances: kernel runs bf16
    # inputs with f32 accumulation, per the review's correctness note).
    x_ref, av_ref, aq_ref = hie_co_atten_ref(img_features, que_features, params)
    assert bool(jnp.allclose(x, x_ref, atol=3e-2, rtol=3e-2))
    assert bool(jnp.allclose(av, av_ref, atol=5e-3, rtol=3e-2))
    assert bool(jnp.allclose(aq, aq_ref, atol=5e-3, rtol=3e-2))

    print("KERNEL_OK")
</pallas_src>

<mosaic_0001>
module attributes {stable_mosaic.version = 11 : i64} {
  func.func @coatten_kernel(%arg0: i32, %arg1: memref<8x16x128xbf16, #tpu.memory_space<vmem>>, %arg2: memref<8x8x128xbf16, #tpu.memory_space<vmem>>, %arg3: memref<128x128xbf16, #tpu.memory_space<vmem>>, %arg4: memref<1x128xf32, #tpu.memory_space<vmem>>, %arg5: memref<128x256xbf16, #tpu.memory_space<vmem>>, %arg6: memref<1x256xf32, #tpu.memory_space<vmem>>, %arg7: memref<128x256xbf16, #tpu.memory_space<vmem>>, %arg8: memref<1x256xf32, #tpu.memory_space<vmem>>, %arg9: memref<1x128xf32, #tpu.memory_space<vmem>>, %arg10: memref<1x128xf32, #tpu.memory_space<vmem>>, %arg11: memref<1x1xf32, #tpu.memory_space<smem>>, %arg12: memref<1x1xf32, #tpu.memory_space<smem>>, %arg13: memref<8x128xf32, #tpu.memory_space<vmem>>, %arg14: memref<8x128xf32, #tpu.memory_space<vmem>>, %arg15: memref<8x16xf32, #tpu.memory_space<vmem>>, %arg16: memref<8x8xf32, #tpu.memory_space<vmem>>) attributes {dimension_semantics = [#tpu.dimension_semantics<parallel>], iteration_bounds = array<i64: 2>, scalar_prefetch = 0 : i64, scratch_operands = 0 : i64, tpu.core_type = #tpu.core_type<tc>, window_params = [{transform_indices = @transform_0, window_bounds = array<i64: 8, 16, 128>}, {transform_indices = @transform_1, window_bounds = array<i64: 8, 8, 128>}, {pipeline_mode = #tpu.pipeline_mode<synchronous>, transform_indices = @transform_2, window_bounds = array<i64: 128, 128>}, {pipeline_mode = #tpu.pipeline_mode<synchronous>, transform_indices = @transform_3, window_bounds = array<i64: 1, 128>}, {pipeline_mode = #tpu.pipeline_mode<synchronous>, transform_indices = @transform_4, window_bounds = array<i64: 128, 256>}, {pipeline_mode = #tpu.pipeline_mode<synchronous>, transform_indices = @transform_5, window_bounds = array<i64: 1, 256>}, {pipeline_mode = #tpu.pipeline_mode<synchronous>, transform_indices = @transform_6, window_bounds = array<i64: 128, 256>}, {pipeline_mode = #tpu.pipeline_mode<synchronous>, transform_indices = @transform_7, window_bounds = array<i64: 1, 256>}, {pipeline_mode = #tpu.pipeline_mode<synchronous>, transform_indices = @transform_8, window_bounds = array<i64: 1, 128>}, {pipeline_mode = #tpu.pipeline_mode<synchronous>, transform_indices = @transform_9, window_bounds = array<i64: 1, 128>}, {transform_indices = @transform_10, window_bounds = array<i64: 1, 1>}, {transform_indices = @transform_11, window_bounds = array<i64: 1, 1>}, {transform_indices = @transform_12, window_bounds = array<i64: 8, 128>}, {transform_indices = @transform_13, window_bounds = array<i64: 8, 128>}, {transform_indices = @transform_14, window_bounds = array<i64: 8, 16>}, {transform_indices = @transform_15, window_bounds = array<i64: 8, 8>}]} {
    %c0 = arith.constant 0 : index
    %c0_0 = arith.constant 0 : index
    %c0_1 = arith.constant 0 : index
    %0 = vector.load %arg1[%c0, %c0_0, %c0_1] : memref<8x16x128xbf16, #tpu.memory_space<vmem>>, vector<8x16x128xbf16>
    %1 = vector.shape_cast %0 : vector<8x16x128xbf16> to vector<128x128xbf16>
    %c0_2 = arith.constant 0 : index
    %c0_3 = arith.constant 0 : index
    %2 = vector.load %arg3[%c0_2, %c0_3] : memref<128x128xbf16, #tpu.memory_space<vmem>>, vector<128x128xbf16>
    %cst = arith.constant dense<0.000000e+00> : vector<128x128xf32>
    %3 = tpu.matmul %1, %2, %cst {dimension_numbers = #tpu.dot_dimension_numbers<[1], [0], [0], [1], [0, 0, 1, 1], [], []>} : vector<128x128xbf16>, vector<128x128xbf16>, vector<128x128xf32> -> vector<128x128xf32>
    %c0_4 = arith.constant 0 : index
    %c0_5 = arith.constant 0 : index
    %4 = vector.load %arg4[%c0_4, %c0_5] : memref<1x128xf32, #tpu.memory_space<vmem>>, vector<1x128xf32>
    %5 = vector.broadcast %4 : vector<1x128xf32> to vector<128x128xf32>
    %6 = arith.addf %3, %5 : vector<128x128xf32>
    %cst_6 = arith.constant 0.000000e+00 : f32
    %7 = vector.broadcast %cst_6 : f32 to vector<128x128xf32>
    %8 = arith.maximumf %6, %7 : vector<128x128xf32>
    %9 = arith.truncf %8 : vector<128x128xf32> to vector<128x128xbf16>
    %c0_7 = arith.constant 0 : index
    %c0_8 = arith.constant 0 : index
    %c0_9 = arith.constant 0 : index
    %10 = vector.load %arg2[%c0_7, %c0_8, %c0_9] : memref<8x8x128xbf16, #tpu.memory_space<vmem>>, vector<8x8x128xbf16>
    %11 = arith.extf %10 : vector<8x8x128xbf16> to vector<8x8x128xf32>
    %12 = vector.shape_cast %11 : vector<8x8x128xf32> to vector<64x128xf32>
    %13 = arith.truncf %12 : vector<64x128xf32> to vector<64x128xbf16>
    %c0_10 = arith.constant 0 : index
    %c0_11 = arith.constant 0 : index
    %14 = vector.load %arg5[%c0_10, %c0_11] : memref<128x256xbf16, #tpu.memory_space<vmem>>, vector<128x256xbf16>
    %cst_12 = arith.constant dense<0.000000e+00> : vector<128x256xf32>
    %15 = tpu.matmul %9, %14, %cst_12 {dimension_numbers = #tpu.dot_dimension_numbers<[1], [0], [0], [1], [0, 0, 1, 1], [], []>} : vector<128x128xbf16>, vector<128x256xbf16>, vector<128x256xf32> -> vector<128x256xf32>
    %c0_13 = arith.constant 0 : index
    %c0_14 = arith.constant 0 : index
    %16 = vector.load %arg6[%c0_13, %c0_14] : memref<1x256xf32, #tpu.memory_space<vmem>>, vector<1x256xf32>
    %17 = vector.broadcast %16 : vector<1x256xf32> to vector<128x256xf32>
    %18 = arith.addf %15, %17 : vector<128x256xf32>
    %19 = vector.extract_strided_slice %18 {offsets = [0, 0], sizes = [128, 128], strides = [1, 1]} : vector<128x256xf32> to vector<128x128xf32>
    %20 = arith.truncf %19 : vector<128x128xf32> to vector<128x128xbf16>
    %21 = vector.shape_cast %20 : vector<128x128xbf16> to vector<8x16x128xbf16>
    %22 = vector.extract_strided_slice %18 {offsets = [0, 128], sizes = [128, 128], strides = [1, 1]} : vector<128x256xf32> to vector<128x128xf32>
    %23 = vector.shape_cast %22 : vector<128x128xf32> to vector<8x16x128xf32>
    %c0_15 = arith.constant 0 : index
    %c0_16 = arith.constant 0 : index
    %24 = vector.load %arg7[%c0_15, %c0_16] : memref<128x256xbf16, #tpu.memory_space<vmem>>, vector<128x256xbf16>
    %cst_17 = arith.constant dense<0.000000e+00> : vector<64x256xf32>
    %25 = tpu.matmul %13, %24, %cst_17 {dimension_numbers = #tpu.dot_dimension_numbers<[1], [0], [0], [1], [0, 0, 1, 1], [], []>} : vector<64x128xbf16>, vector<128x256xbf16>, vector<64x256xf32> -> vector<64x256xf32>
    %c0_18 = arith.constant 0 : index
    %c0_19 = arith.constant 0 : index
    %26 = vector.load %arg8[%c0_18, %c0_19] : memref<1x256xf32, #tpu.memory_space<vmem>>, vector<1x256xf32>
    %27 = vector.broadcast %26 : vector<1x256xf32> to vector<64x256xf32>
    %28 = arith.addf %25, %27 : vector<64x256xf32>
    %29 = vector.extract_strided_slice %28 {offsets = [0, 0], sizes = [64, 128], strides = [1, 1]} : vector<64x256xf32> to vector<64x128xf32>
    %30 = arith.truncf %29 : vector<64x128xf32> to vector<64x128xbf16>
    %31 = vector.shape_cast %30 : vector<64x128xbf16> to vector<8x8x128xbf16>
    %32 = vector.extract_strided_slice %28 {offsets = [0, 128], sizes = [64, 128], strides = [1, 1]} : vector<64x256xf32> to vector<64x128xf32>
    %33 = vector.shape_cast %32 : vector<64x128xf32> to vector<8x8x128xf32>
    "tpu.trace_start"() <{level = 10 : i32, message = "bwe,bke->bwk"}> : () -> ()
    %cst_20 = arith.constant dense<0.000000e+00> : vector<8x8x16xf32>
    %34 = tpu.matmul %31, %21, %cst_20 {dimension_numbers = #tpu.dot_dimension_numbers<[2], [2], [1], [1], [0, 0, 0, 1, 1, 1], [0], [0]>} : vector<8x8x128xbf16>, vector<8x16x128xbf16>, vector<8x8x16xf32> -> vector<8x8x16xf32>
    "tpu.trace_stop"() : () -> ()
    %35 = math.tanh %34 : vector<8x8x16xf32>
    %36 = arith.truncf %35 : vector<8x8x16xf32> to vector<8x8x16xbf16>
    %37 = arith.truncf %23 : vector<8x16x128xf32> to vector<8x16x128xbf16>
    %38 = arith.truncf %33 : vector<8x8x128xf32> to vector<8x8x128xbf16>
    %c0_21 = arith.constant 0 : index
    %c0_22 = arith.constant 0 : index
    %39 = vector.load %arg9[%c0_21, %c0_22] : memref<1x128xf32, #tpu.memory_space<vmem>>, vector<1x128xf32>
    %40 = vector.shape_cast %39 : vector<1x128xf32> to vector<1x1x128xf32>
    %c0_23 = arith.constant 0 : index
    %c0_24 = arith.constant 0 : index
    %41 = vector.load %arg10[%c0_23, %c0_24] : memref<1x128xf32, #tpu.memory_space<vmem>>, vector<1x128xf32>
    %42 = vector.shape_cast %41 : vector<1x128xf32> to vector<1x1x128xf32>
    "tpu.trace_start"() <{level = 10 : i32, message = "bwk,bwe->bke"}> : () -> ()
    %cst_25 = arith.constant dense<0.000000e+00> : vector<8x16x128xf32>
    %43 = tpu.matmul %36, %38, %cst_25 {dimension_numbers = #tpu.dot_dimension_numbers<[1], [1], [2], [2], [0, 0, 0, 2, 1, 2], [0], [0]>} : vector<8x8x16xbf16>, vector<8x8x128xbf16>, vector<8x16x128xf32> -> vector<8x16x128xf32>
    "tpu.trace_stop"() : () -> ()
    %44 = arith.addf %23, %43 : vector<8x16x128xf32>
    %45 = math.tanh %44 : vector<8x16x128xf32>
    %46 = vector.broadcast %40 : vector<1x1x128xf32> to vector<8x16x128xf32>
    %47 = arith.mulf %45, %46 : vector<8x16x128xf32>
    %cst_26 = arith.constant dense<0.000000e+00> : vector<8x16xf32>
    %48 = vector.multi_reduction <add>, %47, %cst_26 [2] : vector<8x16x128xf32> to vector<8x16xf32>
    %c0_27 = arith.constant 0 : index
    %c0_28 = arith.constant 0 : index
    %49 = memref.load %arg11[%c0_27, %c0_28] : memref<1x1xf32, #tpu.memory_space<smem>>
    %50 = vector.broadcast %49 : f32 to vector<8x16xf32>
    %51 = arith.addf %48, %50 : vector<8x16xf32>
    %cst_29 = arith.constant dense<0xFF800000> : vector<8xf32>
    %52 = vector.multi_reduction <maximumf>, %51, %cst_29 [1] : vector<8x16xf32> to vector<8xf32>
    %cst_30 = arith.constant 0xFF800000 : f32
    %53 = vector.broadcast %cst_30 : f32 to vector<8xf32>
    %54 = arith.maximumf %53, %52 : vector<8xf32>
    %55 = vector.shape_cast %54 : vector<8xf32> to vector<8x1xf32>
    %56 = vector.broadcast %55 : vector<8x1xf32> to vector<8x16xf32>
    %57 = arith.subf %51, %56 : vector<8x16xf32>
    %58 = math.exp %57 : vector<8x16xf32>
    %cst_31 = arith.constant dense<0.000000e+00> : vector<8xf32>
    %59 = vector.multi_reduction <add>, %58, %cst_31 [1] : vector<8x16xf32> to vector<8xf32>
    %60 = vector.shape_cast %59 : vector<8xf32> to vector<8x1xf32>
    %61 = vector.broadcast %60 : vector<8x1xf32> to vector<8x16xf32>
    %62 = arith.divf %58, %61 : vector<8x16xf32>
    %63 = vector.shape_cast %8 : vector<128x128xf32> to vector<8x16x128xf32>
    %64 = vector.shape_cast %62 : vector<8x16xf32> to vector<8x16x1xf32>
    %65 = vector.broadcast %64 : vector<8x16x1xf32> to vector<8x16x128xf32>
    %66 = arith.mulf %65, %63 : vector<8x16x128xf32>
    %cst_32 = arith.constant dense<0.000000e+00> : vector<8x128xf32>
    %67 = vector.multi_reduction <add>, %66, %cst_32 [1] : vector<8x16x128xf32> to vector<8x128xf32>
    %c0_33 = arith.constant 0 : index
    %c0_34 = arith.constant 0 : index
    %68 = vector.load %arg13[%c0_33, %c0_34] : memref<8x128xf32, #tpu.memory_space<vmem>>, vector<8x128xf32>
    tpu.vector_store %arg13[%c0_33, %c0_34], %67 {strides = array<i32>} : memref<8x128xf32, #tpu.memory_space<vmem>>, vector<8x128xf32>,
    %c0_35 = arith.constant 0 : index
    %c0_36 = arith.constant 0 : index
    %69 = vector.load %arg15[%c0_35, %c0_36] : memref<8x16xf32, #tpu.memory_space<vmem>>, vector<8x16xf32>
    tpu.vector_store %arg15[%c0_35, %c0_36], %62 {strides = array<i32>} : memref<8x16xf32, #tpu.memory_space<vmem>>, vector<8x16xf32>,
    "tpu.trace_start"() <{level = 10 : i32, message = "bwk,bke->bwe"}> : () -> ()
    %cst_37 = arith.constant dense<0.000000e+00> : vector<8x8x128xf32>
    %70 = tpu.matmul %36, %37, %cst_37 {dimension_numbers = #tpu.dot_dimension_numbers<[2], [1], [1], [2], [0, 0, 0, 1, 1, 2], [0], [0]>} : vector<8x8x16xbf16>, vector<8x16x128xbf16>, vector<8x8x128xf32> -> vector<8x8x128xf32>
    "tpu.trace_stop"() : () -> ()
    %71 = arith.addf %33, %70 : vector<8x8x128xf32>
    %72 = math.tanh %71 : vector<8x8x128xf32>
    %73 = vector.broadcast %42 : vector<1x1x128xf32> to vector<8x8x128xf32>
    %74 = arith.mulf %72, %73 : vector<8x8x128xf32>
    %cst_38 = arith.constant dense<0.000000e+00> : vector<8x8xf32>
    %75 = vector.multi_reduction <add>, %74, %cst_38 [2] : vector<8x8x128xf32> to vector<8x8xf32>
    %c0_39 = arith.constant 0 : index
    %c0_40 = arith.constant 0 : index
    %76 = memref.load %arg12[%c0_39, %c0_40] : memref<1x1xf32, #tpu.memory_space<smem>>
    %77 = vector.broadcast %76 : f32 to vector<8x8xf32>
    %78 = arith.addf %75, %77 : vector<8x8xf32>
    %cst_41 = arith.constant dense<0xFF800000> : vector<8xf32>
    %79 = vector.multi_reduction <maximumf>, %78, %cst_41 [1] : vector<8x8xf32> to vector<8xf32>
    %cst_42 = arith.constant 0xFF800000 : f32
    %80 = vector.broadcast %cst_42 : f32 to vector<8xf32>
    %81 = arith.maximumf %80, %79 : vector<8xf32>
    %82 = vector.shape_cast %81 : vector<8xf32> to vector<8x1xf32>
    %83 = vector.broadcast %82 : vector<8x1xf32> to vector<8x8xf32>
    %84 = arith.subf %78, %83 : vector<8x8xf32>
    %85 = math.exp %84 : vector<8x8xf32>
    %cst_43 = arith.constant dense<0.000000e+00> : vector<8xf32>
    %86 = vector.multi_reduction <add>, %85, %cst_43 [1] : vector<8x8xf32> to vector<8xf32>
    %87 = vector.shape_cast %86 : vector<8xf32> to vector<8x1xf32>
    %88 = vector.broadcast %87 : vector<8x1xf32> to vector<8x8xf32>
    %89 = arith.divf %85, %88 : vector<8x8xf32>
    %90 = vector.shape_cast %89 : vector<8x8xf32> to vector<8x8x1xf32>
    %91 = vector.broadcast %90 : vector<8x8x1xf32> to vector<8x8x128xf32>
    %92 = arith.mulf %91, %11 : vector<8x8x128xf32>
    %cst_44 = arith.constant dense<0.000000e+00> : vector<8x128xf32>
    %93 = vector.multi_reduction <add>, %92, %cst_44 [1] : vector<8x8x128xf32> to vector<8x128xf32>
    %c0_45 = arith.constant 0 : index
    %c0_46 = arith.constant 0 : index
    %94 = vector.load %arg14[%c0_45, %c0_46] : memref<8x128xf32, #tpu.memory_space<vmem>>, vector<8x128xf32>
    tpu.vector_store %arg14[%c0_45, %c0_46], %93 {strides = array<i32>} : memref<8x128xf32, #tpu.memory_space<vmem>>, vector<8x128xf32>,
    %c0_47 = arith.constant 0 : index
    %c0_48 = arith.constant 0 : index
    %95 = vector.load %arg16[%c0_47, %c0_48] : memref<8x8xf32, #tpu.memory_space<vmem>>, vector<8x8xf32>
    tpu.vector_store %arg16[%c0_47, %c0_48], %89 {strides = array<i32>} : memref<8x8xf32, #tpu.memory_space<vmem>>, vector<8x8xf32>,
    return
  }
  func.func @transform_0(%arg0: i32) -> (i32, i32, i32) {
    %c0_i32 = arith.constant 0 : i32
    %c0_i32_0 = arith.constant 0 : i32
    %c0_i32_1 = arith.constant 0 : i32
    return %arg0, %c0_i32, %c0_i32_0 : i32, i32, i32
  }
  func.func @transform_1(%arg0: i32) -> (i32, i32, i32) {
    %c0_i32 = arith.constant 0 : i32
    %c0_i32_0 = arith.constant 0 : i32
    %c0_i32_1 = arith.constant 0 : i32
    return %arg0, %c0_i32, %c0_i32_0 : i32, i32, i32
  }
  func.func @transform_2(%arg0: i32) -> (i32, i32) {
    %c0_i32 = arith.constant 0 : i32
    %c0_i32_0 = arith.constant 0 : i32
    %c0_i32_1 = arith.constant 0 : i32
    return %c0_i32, %c0_i32_0 : i32, i32
  }
  func.func @transform_3(%arg0: i32) -> (i32, i32) {
    %c0_i32 = arith.constant 0 : i32
    %c0_i32_0 = arith.constant 0 : i32
    %c0_i32_1 = arith.constant 0 : i32
    return %c0_i32, %c0_i32_0 : i32, i32
  }
  func.func @transform_4(%arg0: i32) -> (i32, i32) {
    %c0_i32 = arith.constant 0 : i32
    %c0_i32_0 = arith.constant 0 : i32
    %c0_i32_1 = arith.constant 0 : i32
    return %c0_i32, %c0_i32_0 : i32, i32
  }
  func.func @transform_5(%arg0: i32) -> (i32, i32) {
    %c0_i32 = arith.constant 0 : i32
    %c0_i32_0 = arith.constant 0 : i32
    %c0_i32_1 = arith.constant 0 : i32
    return %c0_i32, %c0_i32_0 : i32, i32
  }
  func.func @transform_6(%arg0: i32) -> (i32, i32) {
    %c0_i32 = arith.constant 0 : i32
    %c0_i32_0 = arith.constant 0 : i32
    %c0_i32_1 = arith.constant 0 : i32
    return %c0_i32, %c0_i32_0 : i32, i32
  }
  func.func @transform_7(%arg0: i32) -> (i32, i32) {
    %c0_i32 = arith.constant 0 : i32
    %c0_i32_0 = arith.constant 0 : i32
    %c0_i32_1 = arith.constant 0 : i32
    return %c0_i32, %c0_i32_0 : i32, i32
  }
  func.func @transform_8(%arg0: i32) -> (i32, i32) {
    %c0_i32 = arith.constant 0 : i32
    %c0_i32_0 = arith.constant 0 : i32
    %c0_i32_1 = arith.constant 0 : i32
    return %c0_i32, %c0_i32_0 : i32, i32
  }
  func.func @transform_9(%arg0: i32) -> (i32, i32) {
    %c0_i32 = arith.constant 0 : i32
    %c0_i32_0 = arith.constant 0 : i32
    %c0_i32_1 = arith.constant 0 : i32
    return %c0_i32, %c0_i32_0 : i32, i32
  }
  func.func @transform_10(%arg0: i32) -> (i32, i32) {
    %c0_i32 = arith.constant 0 : i32
    %c0_i32_0 = arith.constant 0 : i32
    %c0_i32_1 = arith.constant 0 : i32
    return %c0_i32, %c0_i32_0 : i32, i32
  }
  func.func @transform_11(%arg0: i32) -> (i32, i32) {
    %c0_i32 = arith.constant 0 : i32
    %c0_i32_0 = arith.constant 0 : i32
    %c0_i32_1 = arith.constant 0 : i32
    return %c0_i32, %c0_i32_0 : i32, i32
  }
  func.func @transform_12(%arg0: i32) -> (i32, i32) {
    %c0_i32 = arith.constant 0 : i32
    %c0_i32_0 = arith.constant 0 : i32
    return %arg0, %c0_i32 : i32, i32
  }
  func.func @transform_13(%arg0: i32) -> (i32, i32) {
    %c0_i32 = arith.constant 0 : i32
    %c0_i32_0 = arith.constant 0 : i32
    return %arg0, %c0_i32 : i32, i32
  }
  func.func @transform_14(%arg0: i32) -> (i32, i32) {
    %c0_i32 = arith.constant 0 : i32
    %c0_i32_0 = arith.constant 0 : i32
    return %arg0, %c0_i32 : i32, i32
  }
  func.func @transform_15(%arg0: i32) -> (i32, i32) {
    %c0_i32 = arith.constant 0 : i32
    %c0_i32_0 = arith.constant 0 : i32
    return %arg0, %c0_i32 : i32, i32
  }
}

</mosaic_0001>

<bundles_post_ra>
// kernel: tpu_custom_call.1
= control target key start
LH: loop header
LB: loop body
LE: loop exit
PB: predicated region body
PF: predicated region fallthrough
CT: control target
= control target key end

     0   :  { %s6519_s0 = inlined_call_operand.hbm [shape: bf16[16,16,128], index: 0, kind: input, shape index: {}]   ;;  %s6520_s1 = inlined_call_operand.hbm [shape: bf16[16,8,128], index: 1, kind: input, shape index: {}]   ;;  %s6521_s2 = inlined_call_operand.hbm [shape: bf16[128,128], index: 2, kind: input, shape index: {}]   ;;  %s6522_s3 = inlined_call_operand.vmem [shape: f32[1,128], index: 3, kind: input, shape index: {}]   ;;  %s6523_s4 = inlined_call_operand.hbm [shape: bf16[128,256], index: 4, kind: input, shape index: {}]   ;;  %s6524_s5 = inlined_call_operand.vmem [shape: f32[1,256], index: 5, kind: input, shape index: {}]   ;;  %s6525_s6 = inlined_call_operand.hbm [shape: bf16[128,256], index: 6, kind: input, shape index: {}]   ;;  %s6526_s7 = inlined_call_operand.vmem [shape: f32[1,256], index: 7, kind: input, shape index: {}]   ;;  %s6527_s8 = inlined_call_operand.vmem [shape: f32[1,128], index: 8, kind: input, shape index: {}]   ;;  %s6528_s9 = inlined_call_operand.vmem [shape: f32[1,128], index: 9, kind: input, shape index: {}]   ;;  %s6529_s10 = inlined_call_operand.<no memory space> [shape: f32[1,1], index: 10, kind: input, shape index: {}]   ;;  %s6530_s11 = inlined_call_operand.<no memory space> [shape: f32[1,1], index: 11, kind: input, shape index: {}]   ;;  %s6531_s12 = inlined_call_operand.hbm [shape: f32[16,128], index: 12, kind: output, shape index: {0}]   ;;  %s6532_s13 = inlined_call_operand.hbm [shape: f32[16,128], index: 13, kind: output, shape index: {1}]   ;;  %s6533_s14 = inlined_call_operand.hbm [shape: f32[16,16], index: 14, kind: output, shape index: {2}]   ;;  %s6534_s15 = inlined_call_operand.vmem [shape: f32[16,8], index: 15, kind: output, shape index: {3}]  }
   0x1   :  { %6578 = sst [smem:[#allocation38_spill]] %s6519_s0 }
   0x2   :  { %6579 = sst [smem:[#allocation39_spill]] %s6521_s2 }
   0x3   :  { %6580 = sst [smem:[#allocation40_spill]] %s6523_s4 }
   0x4   :  { %6581 = sst [smem:[#allocation41_spill]] %s6525_s6 }
   0x5   :  { %6582 = sst [smem:[#allocation42_spill]] %s6528_s9 }
   0x6   :  { %6583 = sst [smem:[#allocation43_spill]] %s6531_s12 }
   0x7   :  { %6584 = sst [smem:[#allocation44_spill]] %s6532_s13 }
   0x8   :  { %6585 = sst [smem:[#allocation45_spill]] %s6533_s14 }
   0x9   :  { %6586 = sst [smem:[#allocation46_spill]] %s6534_s15 }
   0xa   :  { %21 = sst [smem:[#allocation2]] %s6529_s10 }
   0xb   :  { %22 = sst [smem:[#allocation3]] %s6530_s11 }
   0xc   :  { %23 = vsyncpa [#allocation5], 0 }
   0xd   :  { %25 = vsyncpa [#allocation5 + $0x1], 0 }
   0xe   :  { %26 = vsyncpa [#allocation8], 0 }
   0xf   :  { %28 = vsyncpa [#allocation8 + $0x1], 0 }
  0x10   :  { %29 = vsyncpa [#allocation11], 0 }
  0x11   :  { %30 = vsyncpa [#allocation6], 0 }
  0x12   :  { %32 = vsyncpa [#allocation6 + $0x1], 0 }
  0x13   :  { %33 = vsyncpa [#allocation15], 0 }
  0x14   :  { %35 = vsyncpa [#allocation15 + $0x1], 0  ;;  %s5106_s22 = smov 0   ;;  %s5108_s23 = smov 0  }
  0x15   :  { %s5110_s24 = smov 0   ;;  %s5112_s10 = smov 0  }
  0x16 LB: > { %6587 = sst [smem:[#allocation23_spill]] %s4991_s22  ;;  %s5127_s11 = sadd.s32 4294967295, %s5003_s10   ;;  %s5003_s10 = sphi %s5112_s10, %s6667_s10   ;;  %s4999_s24 = sphi %s5110_s24, %s6666_s24   ;;  %s4995_s23 = sphi %s5108_s23, %s6665_s23   ;;  %s4991_s22 = sphi %s5106_s22, %s6664_s22  }
  0x17   : > { %s6535_s25 = sadd.s32 4294967294, %s5003_s10   ;;  %p61_p0 = scmp.ne.s32.totalorder %s4995_s23, %s4991_s22 }
  0x18   : > { %p6538_p1 = scmp.eq.s32.totalorder %s5127_s11, 0  ;;  %p327_p3 = scmp.eq.s32.totalorder %s6535_s25, 1 }
  0x19   : > { %p4040_p5 = scmp.ge.s32.totalorder %s5003_s10, 1  ;;  %p412_p7 = scmp.lt.s32.totalorder %s5003_s10, 3 }
  0x1a   : > { %p5138_p4 = por %p6538_p1, %p61_p0  ;;  %p5143_p6 = por %p327_p3, %p61_p0 }
  0x1b   : > { %p5148_p8 = pnand %p4040_p5, %p412_p7  ;;  %s5005_s29 = smov [#allocation9]  }
  0x1c   : > { %s6588_s26 = scalar_select %p5138_p4, 1, 0 }
  0x1d   : > { %s6589_s27 = scalar_select %p5143_p6, 1, 0 }
  0x1e   : > { %s6591_s28 = scalar_select %p5148_p8, 1, 0 }
  0x1f   : > { %6590 = sst [smem:[#allocation24_spill]] %s6589_s27  ;;  %s424_s30 = sshll.u32 %s5005_s29, 4  ;;  %s5152_s30 = int_to_ptr.vmem [resolvable:$true] %s424_s30 }
  0x20   : > { %p4422_p9 = pneg %p5148_p8  ;;  %s5006_s17 = smov [#allocation10]  }
  0x21   : > { %s440_s18 = sshll.u32 %s5006_s17, 4  ;;  %s6593_s2 = sld [smem:[#allocation39_spill]]  ;;  %s5163_s18 = int_to_ptr.vmem [resolvable:$true] %s440_s18 }
  0x22   : > { %p5159_p11 = pnand %p4422_p9, %p6538_p1 }
  0x24   : > { %p5173_p13 = pneg %p5159_p11 }
  0x27   : > { %s4721_s21 = scalar_lea.hbm %s6593_s2, 1024 }
  0x28   : > { %p4722_p12 = scmp.ne.s32.totalorder %s6593_s2, %s4721_s21  ;;  %p4728_p5 = scmp.lt.u32.totalorder %s4721_s21, %s6593_s2 }
  0x2a   : > { %p4724_p0 = pnand %p5173_p13, %p4722_p12 }
  0x2c   : > { %p4725_p3 = pneg %p4724_p0 }
  0x2e   : > { %p4730_p7 = pnand %p4728_p5, %p4725_p3 }
  0x30   : > { %4733 = shalt.err (!%p4730_p7)
}
  0x31   : > { %s4734_s25 = scalar_lea.vmem %s5152_s30, 1024  ;;  %p4742_p2 = scmp.lt.s32.totalorder %s5152_s30, %s5152_s30 }
  0x32   : > { %p4735_p9 = scmp.ne.s32.totalorder %s5152_s30, %s4734_s25  ;;  %p4743_p6 = scmp.lt.s32.totalorder %s4734_s25, %s4734_s25 }
  0x34   : > { %p4737_p10 = pnand %p4735_p9, %p5173_p13  ;;  %p4744_p12 = por %p4743_p6, %p4742_p2 }
  0x36   : > { %p4738_p1 = pneg %p4737_p10 }
  0x38   : > { %p4745_p0 = pnand %p4744_p12, %p4738_p1 }
  0x3a   : > { %4748 = shalt.err (!%p4745_p0)
}
  0x3b   : > { %s6542_s19 = smov 64   ;;  %s6544_s22 = smov 4  }
  0x3c   : > { %4425 = dma.hbm_to_vmem [thread:$0]  (!%p5159_p11), %s6593_s2, 1024, %s5152_s30, [#allocation8], %s6542_s19, %s6542_s19, %s6544_s22  }
  0x3d   : > { %s6595_s4 = sld [smem:[#allocation40_spill]] }
  0x43   : > { %s4749_s25 = scalar_lea.hbm %s6595_s4, 2048 }
  0x44   : > { %p4750_p1 = scmp.ne.s32.totalorder %s6595_s4, %s4749_s25  ;;  %p4756_p10 = scmp.lt.u32.totalorder %s4749_s25, %s6595_s4 }
  0x46   : > { %p4752_p2 = pnand %p4750_p1, %p5173_p13 }
  0x48   : > { %p4753_p6 = pneg %p4752_p2 }
  0x4a   : > { %p4758_p3 = pnand %p4756_p10, %p4753_p6 }
  0x4c   : > { %4761 = shalt.err (!%p4758_p3)
}
  0x4d   : > { %s4762_s30 = scalar_lea.vmem %s5163_s18, 2048  ;;  %p4770_p12 = scmp.lt.s32.totalorder %s5163_s18, %s5163_s18 }
  0x4e   : > { %p4763_p5 = scmp.ne.s32.totalorder %s5163_s18, %s4762_s30  ;;  %p4771_p0 = scmp.lt.s32.totalorder %s4762_s30, %s4762_s30 }
  0x50   : > { %p4765_p7 = pnand %p4763_p5, %p5173_p13  ;;  %p4772_p1 = por %p4771_p0, %p4770_p12 }
  0x52   : > { %p4766_p9 = pneg %p4765_p7 }
  0x54   : > { %p4773_p2 = pnand %p4772_p1, %p4766_p9 }
  0x56   : > { %4776 = shalt.err (!%p4773_p2)
}
  0x57   : > { %s5009_s13 = smov 128   ;;  %s5010_s12 = smov 8  }
  0x58   : > { %4428 = dma.hbm_to_vmem [thread:$0]  (!%p5159_p11), %s6595_s4, 2048, %s5163_s18, [#allocation11], %s5009_s13, %s5009_s13, %s5010_s12  }
  0x59   : > { %s5011_s20 = smov [#allocation12]   ;;  %s5221_s29 = sadd.s32 1, %s5003_s10  }
  0x5a   : > { %s456_s21 = sshll.u32 %s5011_s20, 4  ;;  %s6596_s6 = sld [smem:[#allocation41_spill]]  ;;  %s457_s21 = int_to_ptr.vmem [resolvable:$true] %s456_s21 }
  0x60   : > { %s4777_s30 = scalar_lea.hbm %s6596_s6, 2048 }
  0x61   : > { %p4778_p6 = scmp.ne.s32.totalorder %s6596_s6, %s4777_s30  ;;  %p4784_p5 = scmp.lt.u32.totalorder %s4777_s30, %s6596_s6 }
  0x63   : > { %p4780_p10 = pnand %p4778_p6, %p5173_p13 }
  0x65   : > { %p4781_p3 = pneg %p4780_p10 }
  0x67   : > { %p4786_p7 = pnand %p4784_p5, %p4781_p3 }
  0x69   : > { %4789 = shalt.err (!%p4786_p7)
}
  0x6a   : > { %s4790_s18 = scalar_lea.vmem %s457_s21, 2048  ;;  %p4798_p1 = scmp.lt.s32.totalorder %s457_s21, %s457_s21 }
  0x6b   : > { %p4791_p9 = scmp.ne.s32.totalorder %s457_s21, %s4790_s18  ;;  %p4799_p2 = scmp.lt.s32.totalorder %s4790_s18, %s4790_s18 }
  0x6d   : > { %p4793_p12 = pnand %p4791_p9, %p5173_p13  ;;  %p4800_p4 = por %p4799_p2, %p4798_p1 }
  0x6f   : > { %p4794_p0 = pneg %p4793_p12 }
  0x71   : > { %p4801_p8 = pnand %p4800_p4, %p4794_p0 }
  0x73   : > { %4804 = shalt.err (!%p4801_p8)
}
  0x74   : > { %4431 = dma.hbm_to_vmem [thread:$0]  (!%p5159_p11), %s6596_s6, 2048, %s457_s21, [#allocation11], %s5009_s13, %s5009_s13, %s5010_s12  }
  0x75   : > { %s45_s2 = ssub.s32 %s5003_s10, %s5221_s29  ;;  %s48_s9 = sadd.s32 1, %s4999_s24 }
  0x76   : > { %p46_p4 = scmp.eq.s32.totalorder %s45_s2, 0  ;;  %p55_p8 = scmp.ne.s32.totalorder %s4999_s24, %s4995_s23 }
  0x77   : > { %p56_p13 = scmp.eq.s32.totalorder %s5003_s10, 0  ;;  %p4452_p6 = scmp.lt.s32.totalorder %s5003_s10, 2 }
  0x78   : > { %s5249_s27 = scalar_select %p46_p4, %s4999_s24, %s48_s9  }
  0x79   : > { %p57_p10 = por %p56_p13, %p55_p8  ;;  %p6597_p3 = scmp.eq.s32.totalorder %s5127_s11, 1 }
  0x7a   : > { %s5258_s14 = sand.u32 1, %s4999_s24   ;;  %s4150_s13 = sshll.u32 %s5003_s10, 10 }
  0x7b   : > { %p5253_p5 = por %p6597_p3, %p55_p8  ;;  %s4045_s12 = sshll.u32 %s5258_s14, 6 }
  0x7c   : > { %s6599_s0 = sld [smem:[#allocation38_spill]]  ;;  %s489_s17 = scalar_lea.vmem [#allocation4], %s4045_s12 }
  0x7d   : > { %s497_s25 = sshll.u32 %s489_s17, 4  ;;  %p5267_p11 = pnand %p4452_p6, %p57_p10  ;;  %s5271_s25 = int_to_ptr.vmem [resolvable:$true] %s497_s25 }
  0x7e   : > { %s486_s19 = scalar_lea.sflag [#allocation5], %s5258_s14 }
  0x7f   : > { %p4807_p9 = pneg %p5267_p11 }
  0x82   : > { %s5265_s21 = scalar_lea.hbm %s6599_s0, %s4150_s13  ;;  %s4810_s13 = scalar_lea.hbm %s6599_s0, 2048 }
  0x83   : > { %s4805_s22 = scalar_lea.hbm %s5265_s21, 1024  ;;  %p4811_p1 = scmp.lt.u32.totalorder %s5265_s21, %s6599_s0 }
  0x84   : > { %p4806_p7 = scmp.ne.s32.totalorder %s5265_s21, %s4805_s22  ;;  %p4812_p2 = scmp.lt.u32.totalorder %s4810_s13, %s4805_s22 }
  0x85   : > { %p4814_p8 = scmp.lt.u32.totalorder %s4805_s22, %s5265_s21 }
  0x86   : > { %p4808_p12 = pnand %p4807_p9, %p4806_p7  ;;  %p4813_p4 = por %p4812_p2, %p4811_p1 }
  0x88   : > { %p4809_p0 = pneg %p4808_p12  ;;  %p4815_p13 = por %p4814_p8, %p4813_p4 }
  0x8a   : > { %p4816_p6 = pnand %p4815_p13, %p4809_p0 }
  0x8c   : > { %4819 = shalt.err (!%p4816_p6)
}
  0x8d   : > { %s4820_s20 = scalar_lea.vmem %s5271_s25, 1024  ;;  %s5012_s17 = smov [#allocation4]  }
  0x8e   : > { %p4821_p10 = scmp.ne.s32.totalorder %s5271_s25, %s4820_s20  ;;  %s4825_s2 = sshll.u32 %s5012_s17, 4  ;;  %s4826_s2 = int_to_ptr.vmem [resolvable:$false] %s4825_s2 }
  0x8f   : > { %s4827_s9 = scalar_lea.vmem %s4826_s2, 2048  ;;  %p4828_p12 = scmp.lt.s32.totalorder %s5271_s25, %s4826_s2 }
  0x90   : > { %p4823_p3 = pnand %p4821_p10, %p4807_p9  ;;  %p4829_p1 = scmp.lt.s32.totalorder %s4827_s9, %s4820_s20 }
  0x92   : > { %p4824_p7 = pneg %p4823_p3  ;;  %p4830_p2 = por %p4829_p1, %p4828_p12 }
  0x94   : > { %p4831_p4 = pnand %p4830_p2, %p4824_p7 }
  0x96   : > { %4834 = shalt.err (!%p4831_p4)
}
  0x97   : > { %s6601_s22 = smov 4   ;;  %s6602_s13 = smov 64  }
  0x98   : > { %4435 = dma.hbm_to_vmem [thread:$0]  (!%p5267_p11), %s5265_s21, 1024, %s5271_s25, %s486_s19, %s6602_s13, %s6602_s13, %s6601_s22  }
  0x99   : > { %s4049_s12 = sshll.u32 %s5258_s14, 5  ;;  %s4151_s15 = sshll.u32 %s5003_s10, 9 }
  0x9a   : > { %s5310_s2 = scalar_lea.hbm %s6520_s1, %s4151_s15  ;;  %s511_s9 = scalar_lea.vmem [#allocation7], %s4049_s12 }
  0x9b   : > { %s518_s18 = sshll.u32 %s511_s9, 4  ;;  %s6603_s0 = sand.u32 1, %s5003_s10   ;;  %s5312_s18 = int_to_ptr.vmem [resolvable:$true] %s518_s18 }
  0x9c   : > { %s5316_s4 = scalar_lea.sflag [#allocation8], %s6603_s0  ;;  %s4835_s6 = scalar_lea.hbm %s5310_s2, 512 }
  0x9d   : > { %p4836_p0 = scmp.ne.s32.totalorder %s5310_s2, %s4835_s6  ;;  %s4840_s25 = scalar_lea.hbm %s6520_s1, 1024 }
  0x9e   : > { %p4841_p6 = scmp.lt.u32.totalorder %s5310_s2, %s6520_s1  ;;  %p4842_p10 = scmp.lt.u32.totalorder %s4840_s25, %s4835_s6 }
  0x9f   : > { %p4838_p8 = pnand %p4836_p0, %p4807_p9  ;;  %p4844_p7 = scmp.lt.u32.totalorder %s4835_s6, %s5310_s2 }
  0xa0   : > { %p4843_p3 = por %p4842_p10, %p4841_p6 }
  0xa1   : > { %p4839_p13 = pneg %p4838_p8 }
  0xa2   : > { %p4845_p12 = por %p4844_p7, %p4843_p3 }
  0xa4   : > { %p4846_p1 = pnand %p4845_p12, %p4839_p13 }
  0xa6   : > { %4849 = shalt.err (!%p4846_p1)
}
  0xa7   : > { %s4850_s0 = scalar_lea.vmem %s5312_s18, 512  ;;  %s5013_s12 = smov [#allocation7]  }
  0xa8   : > { %p4851_p2 = scmp.ne.s32.totalorder %s5312_s18, %s4850_s0  ;;  %s4855_s20 = sshll.u32 %s5013_s12, 4  ;;  %s4856_s20 = int_to_ptr.vmem [resolvable:$false] %s4855_s20 }
  0xa9   : > { %s4857_s17 = scalar_lea.vmem %s4856_s20, 1024  ;;  %p4858_p8 = scmp.lt.s32.totalorder %s5312_s18, %s4856_s20 }
  0xaa   : > { %p4853_p4 = pnand %p4851_p2, %p4807_p9  ;;  %p4859_p6 = scmp.lt.s32.totalorder %s4857_s17, %s4850_s0 }
  0xac   : > { %p4854_p0 = pneg %p4853_p4  ;;  %p4860_p10 = por %p4859_p6, %p4858_p8 }
  0xae   : > { %p4861_p3 = pnand %p4860_p10, %p4854_p0 }
  0xb0   : > { %4864 = shalt.err (!%p4861_p3)
}
  0xb1   : > { %4438 = dma.hbm_to_vmem [thread:$0]  (!%p5267_p11), %s5310_s2, 512, %s5312_s18, %s5316_s4, %s6602_s13, %s6602_s13, %s6601_s22  }
  0xb2   : > { %p6604_p9 = scmp.ne.s32.totalorder %s6591_s28, 0 }
  0xb4   : > { %530 = sbr.rel (%p6604_p9) target bundleno = 2186 (0x88a), region = 68 }
  0xbb   : > { %s5348_s6 = sand.u32 1, %s4995_s23   ;;  %p6605_p13 = scmp.ne.s32.totalorder %s6588_s26, 0 }
  0xbc   : > { %s4053_s9 = sshll.u32 %s5348_s6, 6  ;;  %s533_s14 = scalar_lea.sflag [#allocation5], %s5348_s6 }
  0xbd   : > { %s5352_s21 = scalar_lea.vmem [#allocation4], %s4053_s9 }
  0xbe   : > { %4966 = dma.done.wait (%p6605_p13), %s533_s14, 1024  }
  0xbf   : > { %4968 = vsyncadd (%p6605_p13), %s533_s14, 4294966272  ;;  %s541_s4 = sand.u32 1, %s5127_s11   ;;  %s4054_s28 = sshll.u32 %s5348_s6, 5 }
  0xc0   : > { %s542_s30 = scalar_lea.sflag [#allocation8], %s541_s4  ;;  %s5362_s18 = scalar_lea.vmem [#allocation7], %s4054_s28 }
  0xc1   : > { %4970 = dma.done.wait (%p6605_p13), %s542_s30, 512  }
  0xc2   : > { %4972 = vsyncadd (%p6605_p13), %s542_s30, 4294966784  ;;  %p6606_p11 = scmp.eq.s32.totalorder %s5127_s11, 0 }
  0xc4   : > { %4974 = dma.done.wait (%p6606_p11), [#allocation8], 1024   ;;  %p6607_p7 = pmov %p6606_p11 }
  0xc6   : > { %4976 = vsyncadd (%p6607_p7), [#allocation8], 4294966272  ;;  %p6608_p12 = pmov %p6607_p7 }
  0xc7   : > { %p6609_p1 = pmov %p6607_p7 }
  0xc8   : > { %4978 = dma.done.wait (%p6608_p12), [#allocation11], 4096  }
  0xc9   : > { %4980 = vsyncadd (%p6609_p1), [#allocation11], 4294963200  ;;  %v4501_v0 = vld [vmem:[#allocation9] sm:$0xff]   ;;  %v4502_v1 = vld [vmem:[#allocation9 + $0x8] sm:$0xff]   ;;  %v5014_v44 = vmov 0   ;;  %vm5016_vm0 = vmmov 0  }
  0xca   : > { %4224 = vmatprep.subr.bf16.mxu0 %v4501_v0  ;;  %v4503_v2 = vld [vmem:[#allocation9 + $0x10] sm:$0xff]   ;;  %v4504_v3 = vld [vmem:[#allocation9 + $0x18] sm:$0xff]   ;;  %v4509_v4 = vld [vmem:[%s5352_s21] sm:$0xff]   ;;  %1046 = vmatprep.mubr.bf16.mxu1 %v5014_v44  ;;  %vm1722_vm1 = vcmask 1043456   ;;  %vm1718_vm2 = vcmask 64512   ;;  %vm2419_vm3 = vcmask 130048  }
  0xcb   : > { %4225 = vmatpush3.bf16.msra.mxu0 %v4501_v0  ;;  %4240 = vmatprep.mubr.bf16.mxu0 %v4509_v4  ;;  %v4505_v5 = vld [vmem:[#allocation9 + $0x20] sm:$0xff]   ;;  %v4506_v6 = vld [vmem:[#allocation9 + $0x28] sm:$0xff]   ;;  %v4520_v9 = vld [vmem:[#allocation10 + $0x14] ss:$8 sps:$4 sm:$0xff]   ;;  %s6623_s17 = sld [smem:[#allocation42_spill]]  ;;  %s2294_s9 = sld [smem:[#allocation2]] }
  0xcc   : > { %4226 = vmatprep.subr.bf16.mxu0 %v4502_v1  ;;  %v4517_v7 = vld [vmem:[#allocation10 + $0x4] ss:$8 sps:$4 sm:$0xff]   ;;  %v4519_v8 = vld [vmem:[#allocation10] ss:$8 sps:$4 sm:$0xff]   ;;  %v4507_v10 = vld [vmem:[#allocation9 + $0x30] sm:$0xff]   ;;  %vm2339_vm4 = vcmask 130112  }
  0xcd   : > { %1014 = vmatprep.subr.bf16.mxu1 %v4517_v7  ;;  %v4522_v11 = vld [vmem:[#allocation10 + $0x10] ss:$8 sps:$4 sm:$0xff]   ;;  %v4523_v12 = vld [vmem:[#allocation10 + $0x24] ss:$8 sps:$4 sm:$0xff]   ;;  %v4525_v14 = vld [vmem:[#allocation10 + $0x20] ss:$8 sps:$4 sm:$0xff]  }
  0xce   : > { %1015 = vmatpush1.bf16.msra.mxu1 %v4519_v8  ;;  %v4508_v13 = vld [vmem:[#allocation9 + $0x38] sm:$0xff]   ;;  %v4528_v16 = vld [vmem:[#allocation12 + $0x4] ss:$8 sps:$4 sm:$0xff]   ;;  %v4511_v20 = vld [vmem:[%s5352_s21 + $0x10] sm:$0xff]   ;;  %vm2404_vm5 = vcmask 1041409   ;;  %vm2406_vm6 = vcmask 1042434  }
  0xcf   : > { %4227 = vmatpush3.bf16.msra.mxu0 %v4502_v1  ;;  %1016 = vmatprep.subr.bf16.mxu1 %v4520_v9  ;;  %v4529_v15 = vld [vmem:[#allocation10 + $0x34] ss:$8 sps:$4 sm:$0xff]   ;;  %v4531_v17 = vld [vmem:[#allocation10 + $0x30] ss:$8 sps:$4 sm:$0xff]   ;;  %v4510_v18 = vld [vmem:[%s5352_s21 + $0x8] sm:$0xff]   ;;  %vm2408_vm7 = vcmask 1043459  }
  0xd0   : > { %4228 = vmatprep.subr.bf16.mxu0 %v4503_v2  ;;  %v4535_v19 = vld [vmem:[#allocation10 + $0x44] ss:$8 sps:$4 sm:$0xff]   ;;  %v4526_v21 = vld [vmem:[#allocation12] ss:$8 sps:$4 sm:$0xff]   ;;  %v4534_v22 = vld [vmem:[#allocation12 + $0x14] ss:$8 sps:$4 sm:$0xff]  }
  0xd1   : > { %v4537_v23 = vld [vmem:[#allocation10 + $0x40] ss:$8 sps:$4 sm:$0xff]   ;;  %v4541_v24 = vld [vmem:[#allocation10 + $0x54] ss:$8 sps:$4 sm:$0xff]   ;;  %v4532_v25 = vld [vmem:[#allocation12 + $0x10] ss:$8 sps:$4 sm:$0xff]  }
  0xd2   : > { %1017 = vmatpush1.bf16.msra.mxu1 %v4522_v11  ;;  %v4540_v26 = vld [vmem:[#allocation12 + $0x24] ss:$8 sps:$4 sm:$0xff]   ;;  %v4543_v27 = vld [vmem:[#allocation10 + $0x50] ss:$8 sps:$4 sm:$0xff]   ;;  %v4538_v30 = vld [vmem:[#allocation12 + $0x20] ss:$8 sps:$4 sm:$0xff]  }
  0xd3   : > { %4229 = vmatpush3.bf16.msra.mxu0 %v4503_v2  ;;  %1018 = vmatprep.subr.bf16.mxu1 %v4523_v12  ;;  %v4512_v28 = vld [vmem:[%s5352_s21 + $0x18] sm:$0xff]   ;;  %v4513_v29 = vld [vmem:[%s5352_s21 + $0x20] sm:$0xff]   ;;  %v4514_v33 = vld [vmem:[%s5352_s21 + $0x28] sm:$0xff]   ;;  %vm2410_vm8 = vcmask 1044484   ;;  %vm2412_vm9 = vcmask 1045509   ;;  %vm2414_vm10 = vcmask 1046534  }
  0xd4   : > { %4230 = vmatprep.subr.bf16.mxu0 %v4504_v3  ;;  %v4546_v31 = vld [vmem:[#allocation12 + $0x34] ss:$8 sps:$4 sm:$0xff]   ;;  %v4544_v32 = vld [vmem:[#allocation12 + $0x30] ss:$8 sps:$4 sm:$0xff]   ;;  %v4547_v36 = vld [vmem:[#allocation10 + $0x64] ss:$8 sps:$4 sm:$0xff]  }
  0xd5   : > { %v4515_v34 = vld [vmem:[%s5352_s21 + $0x30] sm:$0xff]   ;;  %v4516_v35 = vld [vmem:[%s5352_s21 + $0x38] sm:$0xff]   ;;  %v4549_v37 = vld [vmem:[#allocation10 + $0x60] ss:$8 sps:$4 sm:$0xff]   ;;  %s3364_s14 = sld [smem:[#allocation3]]  ;;  %vm2416_vm11 = vcmask 1047559  }
  0xd6   : > { %1019 = vmatpush1.bf16.msra.mxu1 %v4525_v14  ;;  %v4552_v38 = vld [vmem:[#allocation12 + $0x44] ss:$8 sps:$4 sm:$0xff]   ;;  %v4550_v39 = vld [vmem:[#allocation12 + $0x40] ss:$8 sps:$4 sm:$0xff]   ;;  %v4553_v40 = vld [vmem:[#allocation10 + $0x74] ss:$8 sps:$4 sm:$0xff]  }
  0xd7   : > { %4231 = vmatpush3.bf16.msra.mxu0 %v4504_v3  ;;  %1020 = vmatprep.subr.bf16.mxu1 %v4529_v15  ;;  %v4555_v41 = vld [vmem:[#allocation10 + $0x70] ss:$8 sps:$4 sm:$0xff]   ;;  %v4558_v42 = vld [vmem:[#allocation12 + $0x54] ss:$8 sps:$4 sm:$0xff]   ;;  %v4561_v45 = vld [vmem:[#allocation12 + $0x64] ss:$8 sps:$4 sm:$0xff]  }
  0xd8   : > { %4232 = vmatprep.subr.bf16.mxu0 %v4505_v5  ;;  %v4556_v43 = vld [vmem:[#allocation12 + $0x50] ss:$8 sps:$4 sm:$0xff]   ;;  %v4559_v46 = vld [vmem:[#allocation12 + $0x60] ss:$8 sps:$4 sm:$0xff]   ;;  %v4564_v47 = vld [vmem:[#allocation12 + $0x74] ss:$8 sps:$4 sm:$0xff]  }
  0xd9   : > { %v4562_v48 = vld [vmem:[#allocation12 + $0x70] ss:$8 sps:$4 sm:$0xff]   ;;  %v886_v49 = vld [vmem:[%s5362_s18] sm:$0xff]   ;;  %v888_v50 = vld [vmem:[%s5362_s18 + $0x8] sm:$0xff]   ;;  %s6320_s21 = sshll.u32 %s5348_s6, 3  ;;  %p625_p2 = scmp.lt.s32.totalorder %s5127_s11, 1 }
  0xda   : > { %1021 = vmatpush1.bf16.msra.mxu1 %v4531_v17  ;;  %v890_v51 = vld [vmem:[%s5362_s18 + $0x10] sm:$0xff]   ;;  %v892_v52 = vld [vmem:[%s5362_s18 + $0x18] sm:$0xff]   ;;  %v5396_v53 = vld [vmem:[%s6522_s3] ss:$0 sm:$0xff]  ;;  %s616_s28 = scalar_lea.vmem [#allocation16], %s6320_s21  ;;  %s6382_s26 = sshll.u32 %s5127_s11, 7 }
  0xdb   : > { %4233 = vmatpush3.bf16.msra.mxu0 %v4505_v5  ;;  %1022 = vmatprep.subr.bf16.mxu1 %v4535_v19  ;;  %s6370_s30 = scalar_select %p625_p2, %s5127_s11, 1 }
  0xdc   : > { %4234 = vmatprep.subr.bf16.mxu0 %v4506_v6  ;;  %s602_s22 = scalar_lea.vmem [#allocation13], %s6320_s21  ;;  %s6654_s19 = sld [smem:[#allocation46_spill]] }
  0xdd   : > { %s3804_s13 = sshll.u32 %s602_s22, 4  ;;  %s6655_s20 = sld [smem:[#allocation43_spill]]  ;;  %s6401_s13 = int_to_ptr.vmem [resolvable:$true] %s3804_s13 }
  0xde   : > { %1023 = vmatpush1.bf16.msra.mxu1 %v4537_v23 }
  0xdf   : > { %4235 = vmatpush3.bf16.msra.mxu0 %v4506_v6  ;;  %1024 = vmatprep.subr.bf16.mxu1 %v4541_v24 }
  0xe0   : > { %4236 = vmatprep.subr.bf16.mxu0 %v4507_v10 }
  0xe2   : > { %1025 = vmatpush1.bf16.msra.mxu1 %v4543_v27 }
  0xe3   : > { %4237 = vmatpush3.bf16.msra.mxu0 %v4507_v10  ;;  %1026 = vmatprep.subr.bf16.mxu1 %v4547_v36 }
  0xe4   : > { %4238 = vmatprep.subr.bf16.mxu0 %v4508_v13 }
  0xe6   : > { %1027 = vmatpush1.bf16.msra.mxu1 %v4549_v37 }
  0xe7   : > { %4239 = vmatpush3.bf16.msra.mxu0 %v4508_v13  ;;  %1028 = vmatprep.subr.bf16.mxu1 %v4553_v40 }
  0xe8   : > { %1243 = vmatprep.subr.bf16.mxu0 %v4528_v16 }
  0xea   : > { %4241 = vmatmul.mubr.bf16.vlgmr.msra.gmra.mrb[0].mxu0 %v4510_v18  ;;  %1029 = vmatpush1.bf16.msra.mxu1 %v4555_v41 }
  0xeb   : > { %4244 = vmatprep.mubr.bf16.mxu0 %v4511_v20  ;;  %1244 = vmatpush1.bf16.msra.mxu0 %v4526_v21 }
  0xec   : > { %1245 = vmatprep.subr.bf16.mxu0 %v4534_v22 }
  0xef   : > { %1246 = vmatpush1.bf16.msra.mxu0 %v4532_v25 }
  0xf0   : > { %1247 = vmatprep.subr.bf16.mxu0 %v4540_v26 }
  0xf2   : > { %4245 = vmatmul.mubr.bf16.gmra.mrb[4].mxu0 %v4512_v28 }
  0xf3   : > { %4248 = vmatprep.mubr.bf16.mxu0 %v4513_v29  ;;  %1248 = vmatpush1.bf16.msra.mxu0 %v4538_v30 }
  0xf4   : > { %1249 = vmatprep.subr.bf16.mxu0 %v4546_v31 }
  0xf7   : > { %1250 = vmatpush1.bf16.msra.mxu0 %v4544_v32 }
  0xf8   : > { %1251 = vmatprep.subr.bf16.mxu0 %v4552_v38 }
  0xfa   : > { %4249 = vmatmul.mubr.bf16.gmra.mrb[8].mxu0 %v4514_v33 }
  0xfb   : > { %4252 = vmatprep.mubr.bf16.mxu0 %v4515_v34  ;;  %1252 = vmatpush1.bf16.msra.mxu0 %v4550_v39 }
  0xfc   : > { %1253 = vmatprep.subr.bf16.mxu0 %v4558_v42 }
  0xff   : > { %1254 = vmatpush1.bf16.msra.mxu0 %v4556_v43 }
 0x100   : > { %1255 = vmatprep.subr.bf16.mxu0 %v4561_v45 }
 0x102   : > { %4253 = vmatmul.mubr.bf16.gmra.mrb[12].mxu0 %v4516_v35 }
 0x103   : > { %1275 = vmatprep.mubr.bf16.mxu0 %v5014_v44  ;;  %1256 = vmatpush1.bf16.msra.mxu0 %v4559_v46 }
 0x104   : > { %1257 = vmatprep.subr.bf16.mxu0 %v4564_v47  ;;  %v5015_v47 = vmov 0.0  }
 0x105   : > { %4262 = vmatprep.subr.bf16.mxu1 %v5015_v47 }
 0x107   : > { %1258 = vmatpush1.bf16.msra.mxu0 %v4562_v48 }
 0x108   : > { %4256 = vmatprep.subr.bf16.mxu0 %v5015_v47 }
 0x10a   : > { %1276 = vmatmul.mubr.bf16.vlgmr.msra.gmra.mrb[16].mxu0 %v886_v49 }
 0x10b   : > { %1285 = vmatprep.mubr.bf16.mxu0 %v5014_v44 }
 0x112   : > { %1286 = vmatmul.mubr.bf16.gmra.mrb[20].mxu0 %v888_v50 }
 0x113   : > { %1295 = vmatprep.mubr.bf16.mxu0 %v5014_v44 }
 0x11a   : > { %1296 = vmatmul.mubr.bf16.gmra.mrb[24].mxu0 %v890_v51  ;;  %v6564_v51 = vlaneseq }
 0x11b   : > { %1305 = vmatprep.mubr.bf16.mxu0 %v5014_v44 }
 0x122   : > { %1306 = vmatmul.mubr.bf16.gmra.mrb[28].mxu0 %v892_v52 }
 0x123   : > { %4258 = vmatprep.mubr.msk.bf16.mxu0 %vm5016_vm0, %v5015_v47 }
 0x1bd   : > { %v4242_v54 = vpop.f32.mrb[0].mxu0 }
 0x1be   : > { %v799_v55 = vpop.f32.mrb[1].mxu0  ;;  %v5414_v2 = vadd.f32 %v4242_v54, %v5396_v53 }
 0x1bf   : > { %v5399_v56 = vadd.f32 %v5396_v53, %v799_v55  ;;  %v4243_v57 = vpop.f32.mrb[2].mxu0 }
 0x1c0   : > { %v802_v58 = vpop.f32.mrb[3].mxu0  ;;  %v5407_v62 = vadd.f32 %v4243_v57, %v5396_v53  ;;  %6610 = vst [vmem:[#allocation25_spill] sm:$0xff] %v5414_v2  ;;  %v6560_v6 = vmax.f32 %v5414_v2, 0.0  ;;  %v1151_v57 = vld [vmem:[%s6526_s7] sm:$0x3] }
 0x1c1   : > { %v5402_v59 = vadd.f32 %v5396_v53, %v802_v58  ;;  %v6562_v60 = vmax.f32 %v5399_v56, 0.0 }
 0x1c2   : > { %v6561_v5 = vmax.f32 %v5407_v62, 0.0 }
 0x1c3   : > { %v6563_v61 = vmax.f32 %v5402_v59, 0.0 }
 0x1c4   : > { %v879_v7 = vpack.c.bf16 %v6561_v5, %v6560_v6 }
 0x1c5   : > { %v878_v63 = vpack.c.bf16 %v6563_v61, %v6562_v60  ;;  %v4246_v0 = vpop.f32.mrb[4].mxu0 }
 0x1c6   : > { %v815_v1 = vpop.f32.mrb[5].mxu0  ;;  %v5433_v16 = vadd.f32 %v4246_v0, %v5396_v53 }
 0x1c7   : > { %1047 = vmatmul.mubr.bf16.vlgmr.msra.gmra.mrb[0].mxu1 %v878_v63  ;;  %v4247_v3 = vpop.f32.mrb[6].mxu0  ;;  %v5424_v8 = vadd.f32 %v5396_v53, %v815_v1 }
 0x1c8   : > { %1056 = vmatprep.mubr.bf16.mxu1 %v5014_v44  ;;  %v818_v4 = vpop.f32.mrb[7].mxu0  ;;  %6613 = vst [vmem:[#allocation28_spill] sm:$0xff] %v5433_v16  ;;  %v5436_v17 = vadd.f32 %v4247_v3, %v5396_v53  ;;  %v6557_v23 = vmax.f32 %v5433_v16, 0.0 }
 0x1c9   : > { %6611 = vst [vmem:[#allocation26_spill] sm:$0xff] %v5424_v8  ;;  %v5427_v9 = vadd.f32 %v5396_v53, %v818_v4  ;;  %v6559_v14 = vmax.f32 %v5424_v8, 0.0 }
 0x1ca   : > { %6614 = vst [vmem:[#allocation29_spill] sm:$0xff] %v5436_v17  ;;  %v6556_v24 = vmax.f32 %v5436_v17, 0.0 }
 0x1cb   : > { %6612 = vst [vmem:[#allocation27_spill] sm:$0xff] %v5427_v9  ;;  %v6558_v15 = vmax.f32 %v5427_v9, 0.0 }
 0x1cc   : > { %v881_v25 = vpack.c.bf16 %v6556_v24, %v6557_v23 }
 0x1cd   : > { %v4250_v10 = vpop.f32.mrb[8].mxu0  ;;  %v880_v18 = vpack.c.bf16 %v6558_v15, %v6559_v14 }
 0x1ce   : > { %v831_v11 = vpop.f32.mrb[9].mxu0  ;;  %v5459_v30 = vadd.f32 %v4250_v10, %v5396_v53 }
 0x1cf   : > { %1057 = vmatmul.mubr.bf16.gmra.mrb[4].mxu1 %v879_v7  ;;  %v4251_v12 = vpop.f32.mrb[10].mxu0  ;;  %v5450_v26 = vadd.f32 %v5396_v53, %v831_v11 }
 0x1d0   : > { %1066 = vmatprep.mubr.bf16.mxu1 %v5014_v44  ;;  %v834_v13 = vpop.f32.mrb[11].mxu0  ;;  %6617 = vst [vmem:[#allocation32_spill] sm:$0xff] %v5459_v30  ;;  %v5462_v31 = vadd.f32 %v4251_v12, %v5396_v53  ;;  %v6553_v33 = vmax.f32 %v5459_v30, 0.0 }
 0x1d1   : > { %6615 = vst [vmem:[#allocation30_spill] sm:$0xff] %v5450_v26  ;;  %v5453_v27 = vadd.f32 %v5396_v53, %v834_v13  ;;  %v6555_v28 = vmax.f32 %v5450_v26, 0.0 }
 0x1d2   : > { %6618 = vst [vmem:[#allocation33_spill] sm:$0xff] %v5462_v31  ;;  %v6552_v34 = vmax.f32 %v5462_v31, 0.0 }
 0x1d3   : > { %6616 = vst [vmem:[#allocation31_spill] sm:$0xff] %v5453_v27  ;;  %v6554_v29 = vmax.f32 %v5453_v27, 0.0 }
 0x1d4   : > { %v883_v35 = vpack.c.bf16 %v6552_v34, %v6553_v33 }
 0x1d5   : > { %v4254_v19 = vpop.f32.mrb[12].mxu0  ;;  %v882_v32 = vpack.c.bf16 %v6554_v29, %v6555_v28 }
 0x1d6   : > { %v847_v20 = vpop.f32.mrb[13].mxu0  ;;  %v5485_v40 = vadd.f32 %v4254_v19, %v5396_v53 }
 0x1d7   : > { %1067 = vmatmul.mubr.bf16.gmra.mrb[8].mxu1 %v880_v18  ;;  %v4255_v21 = vpop.f32.mrb[14].mxu0  ;;  %v5476_v36 = vadd.f32 %v5396_v53, %v847_v20 }
 0x1d8   : > { %1076 = vmatprep.mubr.bf16.mxu1 %v5014_v44  ;;  %v850_v22 = vpop.f32.mrb[15].mxu0  ;;  %6621 = vst [vmem:[#allocation36_spill] sm:$0xff] %v5485_v40  ;;  %v5488_v41 = vadd.f32 %v4255_v21, %v5396_v53  ;;  %v6549_v43 = vmax.f32 %v5485_v40, 0.0 }
 0x1d9   : > { %6619 = vst [vmem:[#allocation34_spill] sm:$0xff] %v5476_v36  ;;  %v5479_v37 = vadd.f32 %v5396_v53, %v850_v22  ;;  %v6550_v38 = vmax.f32 %v5476_v36, 0.0  ;;  %v5512_v53 = vshrl.u32 %v6564_v51, 7 }
 0x1da   : > { %6622 = vst [vmem:[#allocation37_spill] sm:$0xff] %v5488_v41  ;;  %v6548_v45 = vmax.f32 %v5488_v41, 0.0 }
 0x1db   : > { %6620 = vst [vmem:[#allocation35_spill] sm:$0xff] %v5479_v37  ;;  %v6551_v39 = vmax.f32 %v5479_v37, 0.0  ;;  %v5515_v55 = vsub.s32 1, %v5512_v53 }
 0x1dc   : > { %v885_v46 = vpack.c.bf16 %v6548_v45, %v6549_v43 }
 0x1dd   : > { %v884_v42 = vpack.c.bf16 %v6551_v39, %v6550_v38  ;;  %v1277_v48 = vpop.f32.mrb[16].mxu0  ;;  %v5521_v58 = vrot.slane %v1151_v57, %v5515_v55 }
 0x1de   : > { %v5507_v49 = vpop.f32.mrb[17].mxu0 }
 0x1df   : > { %1077 = vmatmul.mubr.bf16.gmra.mrb[12].mxu1 %v881_v25  ;;  %v1281_v50 = vpop.f32.mrb[18].mxu0 }
 0x1e0   : > { %1086 = vmatprep.mubr.bf16.mxu1 %v5014_v44  ;;  %v5509_v52 = vpop.f32.mrb[19].mxu0 }
 0x1e5   : > { %v1287_v54 = vpop.f32.mrb[20].mxu0 }
 0x1e6   : > { %v1289_v63 = vpop.f32.mrb[21].mxu0 }
 0x1e7   : > { %1087 = vmatmul.mubr.bf16.gmra.mrb[16].mxu1 %v882_v32  ;;  %v5524_v0 = vadd.f32 %v1289_v63, %v5521_v58  ;;  %v5526_v1 = vpop.f32.mrb[22].mxu0 }
 0x1e8   : > { %1096 = vmatprep.mubr.bf16.mxu1 %v5014_v44  ;;  %v1293_v3 = vpop.f32.mrb[23].mxu0 }
 0x1e9   : > { %v5529_v4 = vadd.f32 %v1293_v3, %v5521_v58 }
 0x1ed   : > { %v5531_v7 = vpop.f32.mrb[24].mxu0 }
 0x1ee   : > { %v1299_v10 = vpop.f32.mrb[25].mxu0 }
 0x1ef   : > { %1097 = vmatmul.mubr.bf16.gmra.mrb[20].mxu1 %v883_v35  ;;  %v5533_v11 = vpop.f32.mrb[26].mxu0  ;;  %v5536_v12 = vadd.f32 %v1299_v10, %v5521_v58  ;;  %v5552_v35 = vsub.s32 0, %v5512_v53 }
 0x1f0   : > { %1106 = vmatprep.mubr.bf16.mxu1 %v5014_v44  ;;  %v1303_v13 = vpop.f32.mrb[27].mxu0 }
 0x1f1   : > { %v5539_v18 = vadd.f32 %v1303_v13, %v5521_v58  ;;  %v5566_v13 = vrot.slane %v1151_v57, %v5552_v35 }
 0x1f3   : > { %v1278_v38 = vadd.f32 %v1277_v48, %v5566_v13 }
 0x1f5   : > { %v5541_v19 = vpop.f32.mrb[28].mxu0  ;;  %v4152_v33 = vpack.c.bf16 %v1278_v38, %v1278_v38 }
 0x1f6   : > { %v1309_v20 = vpop.f32.mrb[29].mxu0 }
 0x1f7   : > { %1107 = vmatmul.mubr.bf16.gmra.mrb[24].mxu1 %v884_v42  ;;  %v5543_v21 = vpop.f32.mrb[30].mxu0  ;;  %v5546_v25 = vadd.f32 %v1309_v20, %v5521_v58  ;;  %v5557_v42 = vld [vmem:[%s6524_s5] sm:$0x3] }
 0x1f8   : > { %1116 = vmatprep.mubr.bf16.mxu1 %v5014_v44  ;;  %v1313_v22 = vpop.f32.mrb[31].mxu0 }
 0x1f9   : > { %v5549_v32 = vadd.f32 %v1313_v22, %v5521_v58 }
 0x1ff   : > { %1117 = vmatmul.mubr.bf16.gmra.mrb[28].mxu1 %v885_v46  ;;  %v5561_v46 = vrot.slane %v5557_v42, %v5552_v35 }
 0x200   : > { %4264 = vmatprep.mubr.msk.bf16.mxu1 %vm5016_vm0, %v5015_v47 }
 0x29a   : > { %v1048_v63 = vpop.f32.mrb[0].mxu1 }
 0x29b   : > { %v5563_v3 = vpop.f32.mrb[1].mxu1  ;;  %v1049_v20 = vadd.f32 %v1048_v63, %v5561_v46 }
 0x29c   : > { %v1052_v10 = vpop.f32.mrb[2].mxu1 }
 0x29d   : > { %v1053_v22 = vadd.f32 %v1052_v10, %v5561_v46  ;;  %v5570_v45 = vpop.f32.mrb[3].mxu1 }
 0x29f   : > { %v1127_v43 = vpack.c.bf16 %v1053_v22, %v1049_v20  ;;  %v1282_v20 = vadd.f32 %v1281_v50, %v5566_v13 }
 0x2a1   : > { %4257 = vmatpush3.bf16.xpose.msra.mxu0 %v1127_v43  ;;  %v4153_v38 = vpack.c.bf16 %v1282_v20, %v1282_v20 }
 0x2a2   : > { %v1058_v39 = vpop.f32.mrb[4].mxu1  ;;  %4268 = vmatprep.subr.bf16.mxu0 %v5015_v47 }
 0x2a3   : > { %v5574_v34 = vpop.f32.mrb[5].mxu1  ;;  %v1059_v57 = vadd.f32 %v1058_v39, %v5561_v46 }
 0x2a4   : > { %v1062_v29 = vpop.f32.mrb[6].mxu1 }
 0x2a5   : > { %v1063_v28 = vadd.f32 %v1062_v29, %v5561_v46  ;;  %v5578_v63 = vpop.f32.mrb[7].mxu1 }
 0x2a7   : > { %v1128_v10 = vpack.c.bf16 %v1063_v28, %v1059_v57 }
 0x2a8   : > { %4259 = vmatmul.mubr.bf16.vlgmr.msra.gmra.mrb[32].mxu0 %v4152_v33  ;;  %v1288_v33 = vadd.f32 %v1287_v54, %v5566_v13  ;;  %v1292_v54 = vadd.f32 %v5526_v1, %v5566_v13  ;;  %v1298_v1 = vadd.f32 %v5531_v7, %v5566_v13  ;;  %v1302_v7 = vadd.f32 %v5533_v11, %v5566_v13 }
 0x2a9   : > { %4263 = vmatpush3.bf16.xpose.msra.mxu1 %v1128_v10  ;;  %4270 = vmatprep.mubr.msk.bf16.mxu0 %vm5016_vm0, %v5015_v47  ;;  %v5635_v11 = vadd.f32 %v5507_v49, %v5521_v58 }
 0x2aa   : > { %v1068_v43 = vpop.f32.mrb[8].mxu1  ;;  %4274 = vmatprep.subr.bf16.mxu1 %v5015_v47  ;;  %v4154_v10 = vpack.c.bf16 %v1288_v33, %v1288_v33 }
 0x2ab   : > { %v5584_v48 = vpop.f32.mrb[9].mxu1  ;;  %v1069_v39 = vadd.f32 %v1068_v43, %v5561_v46 }
 0x2ac   : > { %v1072_v22 = vpop.f32.mrb[10].mxu1 }
 0x2ad   : > { %v1073_v29 = vadd.f32 %v1072_v22, %v5561_v46  ;;  %v5588_v24 = vpop.f32.mrb[11].mxu1 }
 0x2af   : > { %v1129_v28 = vpack.c.bf16 %v1073_v29, %v1069_v39 }
 0x2b0   : > { %4265 = vmatmul.mubr.bf16.vlgmr.msra.gmra.mrb[32].mxu1 %v4153_v38 }
 0x2b1   : > { %4269 = vmatpush3.bf16.xpose.msra.mxu0 %v1129_v28  ;;  %4276 = vmatprep.mubr.msk.bf16.mxu1 %vm5016_vm0, %v5015_v47  ;;  %v4155_v28 = vpack.c.bf16 %v1292_v54, %v1292_v54  ;;  %v4156_v54 = vpack.c.bf16 %v1298_v1, %v1298_v1  ;;  %v4157_v1 = vpack.c.bf16 %v1302_v7, %v1302_v7 }
 0x2b2   : > { %v1078_v50 = vpop.f32.mrb[12].mxu1  ;;  %4280 = vmatprep.subr.bf16.mxu0 %v5015_v47 }
 0x2b3   : > { %v5594_v57 = vpop.f32.mrb[13].mxu1  ;;  %v1079_v43 = vadd.f32 %v1078_v50, %v5561_v46 }
 0x2b4   : > { %v1082_v20 = vpop.f32.mrb[14].mxu1 }
 0x2b5   : > { %v1083_v22 = vadd.f32 %v1082_v20, %v5561_v46  ;;  %v5598_v23 = vpop.f32.mrb[15].mxu1 }
 0x2b7   : > { %v1130_v38 = vpack.c.bf16 %v1083_v22, %v1079_v43 }
 0x2b8   : > { %4271 = vmatmul.mubr.bf16.vlgmr.msra.gmra.mrb[36].mxu0 %v4154_v10 }
 0x2b9   : > { %4275 = vmatpush3.bf16.xpose.msra.mxu1 %v1130_v38  ;;  %4282 = vmatprep.mubr.msk.bf16.mxu0 %vm5016_vm0, %v5015_v47 }
 0x2ba   : > { %v1088_v39 = vpop.f32.mrb[16].mxu1  ;;  %4286 = vmatprep.subr.bf16.mxu1 %v5015_v47 }
 0x2bb   : > { %v5605_v29 = vpop.f32.mrb[17].mxu1  ;;  %v1089_v50 = vadd.f32 %v1088_v39, %v5561_v46 }
 0x2bc   : > { %v1092_v33 = vpop.f32.mrb[18].mxu1 }
 0x2bd   : > { %v1093_v20 = vadd.f32 %v1092_v33, %v5561_v46  ;;  %v5609_v43 = vpop.f32.mrb[19].mxu1 }
 0x2bf   : > { %v1131_v10 = vpack.c.bf16 %v1093_v20, %v1089_v50 }
 0x2c0   : > { %4277 = vmatmul.mubr.bf16.vlgmr.msra.gmra.mrb[36].mxu1 %v4155_v28 }
 0x2c1   : > { %4281 = vmatpush3.bf16.xpose.msra.mxu0 %v1131_v10  ;;  %4288 = vmatprep.mubr.msk.bf16.mxu1 %vm5016_vm0, %v5015_v47 }
 0x2c2   : > { %v1098_v22 = vpop.f32.mrb[20].mxu1  ;;  %4292 = vmatprep.subr.bf16.mxu0 %v5015_v47 }
 0x2c3   : > { %v5616_v38 = vpop.f32.mrb[21].mxu1  ;;  %v1099_v33 = vadd.f32 %v1098_v22, %v5561_v46 }
 0x2c4   : > { %v1102_v39 = vpop.f32.mrb[22].mxu1 }
 0x2c5   : > { %v1103_v15 = vadd.f32 %v1102_v39, %v5561_v46  ;;  %v5620_v50 = vpop.f32.mrb[23].mxu1 }
 0x2c7   : > { %v1132_v28 = vpack.c.bf16 %v1103_v15, %v1099_v33  ;;  %v1308_v33 = vadd.f32 %v5541_v19, %v5566_v13 }
 0x2c8   : > { %4283 = vmatmul.mubr.bf16.vlgmr.msra.gmra.mrb[40].mxu0 %v4156_v54 }
 0x2c9   : > { %4287 = vmatpush3.bf16.xpose.msra.mxu1 %v1132_v28  ;;  %4294 = vmatprep.mubr.msk.bf16.mxu0 %vm5016_vm0, %v5015_v47 }
 0x2ca   : > { %v1108_v20 = vpop.f32.mrb[24].mxu1  ;;  %4298 = vmatprep.subr.bf16.mxu1 %v5015_v47 }
 0x2cb   : > { %v5627_v10 = vpop.f32.mrb[25].mxu1  ;;  %v1109_v39 = vadd.f32 %v1108_v20, %v5561_v46  ;;  %v4158_v20 = vpack.c.bf16 %v1308_v33, %v1308_v33  ;;  %v1312_v33 = vadd.f32 %v5543_v21, %v5566_v13 }
 0x2cc   : > { %v1112_v22 = vpop.f32.mrb[26].mxu1 }
 0x2cd   : > { %v1113_v14 = vadd.f32 %v1112_v22, %v5561_v46  ;;  %v5631_v15 = vpop.f32.mrb[27].mxu1 }
 0x2cf   : > { %v1133_v54 = vpack.c.bf16 %v1113_v14, %v1109_v39  ;;  %v1692_v14 = vpack.c.bf16 %v5635_v11, %v5635_v11 }
 0x2d0   : > { %4289 = vmatmul.mubr.bf16.vlgmr.msra.gmra.mrb[40].mxu1 %v4157_v1 }
 0x2d1   : > { %4293 = vmatpush3.bf16.xpose.msra.mxu0 %v1133_v54  ;;  %4300 = vmatprep.mubr.msk.bf16.mxu1 %vm5016_vm0, %v5015_v47  ;;  %v5652_v54 = vadd.f32 %v5509_v52, %v5521_v58  ;;  %v1724_v6 = vsel %vm1722_vm1, %v1692_v14, 0  ;;  %v4159_v52 = vpack.c.bf16 %v1312_v33, %v1312_v33 }
 0x2d2   : > { %v1118_v28 = vpop.f32.mrb[28].mxu1  ;;  %4304 = vmatprep.subr.bf16.mxu0 %v5015_v47 }
 0x2d3   : > { %v5642_v7 = vpop.f32.mrb[29].mxu1  ;;  %v1119_v49 = vadd.f32 %v1118_v28, %v5561_v46 }
 0x2d4   : > { %v1122_v22 = vpop.f32.mrb[30].mxu1 }
 0x2d5   : > { %v1123_v1 = vadd.f32 %v1122_v22, %v5561_v46  ;;  %v5648_v19 = vpop.f32.mrb[31].mxu1  ;;  %v1693_v46 = vpack.c.bf16 %v5652_v54, %v5652_v54 }
 0x2d7   : > { %v1134_v39 = vpack.c.bf16 %v1123_v1, %v1119_v49  ;;  %v1787_v58 = vsel %vm1722_vm1, %v1693_v46, 0 }
 0x2d8   : > { %4295 = vmatmul.mubr.bf16.vlgmr.msra.gmra.mrb[44].mxu0 %v4158_v20 }
 0x2d9   : > { %4299 = vmatpush3.bf16.xpose.msra.mxu1 %v1134_v39  ;;  %4305 = vmatpush3.bf16.msra.mxu0 %v1724_v6 }
 0x2da   : > { %4310 = vmatprep.subr.bf16.mxu1 %v5015_v47  ;;  %4306 = vmatprep.mubr.msk.bf16.mxu0 %vm5016_vm0, %v5015_v47 }
 0x2db   : > { %4316 = vmatprep.subr.bf16.mxu0 %v5015_v47 }
 0x2e0   : > { %4301 = vmatmul.mubr.bf16.vlgmr.msra.gmra.mrb[44].mxu1 %v4159_v52 }
 0x2e1   : > { %4311 = vmatpush3.bf16.msra.mxu1 %v1787_v58  ;;  %4312 = vmatprep.mubr.msk.bf16.mxu1 %vm5016_vm0, %v5015_v47 }
 0x2e2   : > { %4322 = vmatprep.subr.bf16.mxu1 %v5015_v47 }
 0x37b   : > { %v1382_v6 = vpop.f32.mrb[32].mxu0 }
 0x37c   : > { %4573 = vtanh.f32 %v1382_v6  ;;  %v4260_v21 = vpop.f32.mrb[33].mxu0 }
 0x37d   : > { %v1385_v13 = vpop.f32.mrb[34].mxu0 }
 0x37e   : > { %v4261_v28 = vpop.f32.mrb[35].mxu0 }
 0x383   : > { %v1422_v14 = vpop.f32.mrb[32].mxu1 }
 0x384   : > { %4575 = vtanh.f32 %v1422_v14  ;;  %v4266_v20 = vpop.f32.mrb[33].mxu1 }
 0x385   : > { %v1425_v22 = vpop.f32.mrb[34].mxu1 }
 0x386   : > { %v4574_v49 = vpop.eup %4573  ;;  %v4267_v1 = vpop.f32.mrb[35].mxu1 }
 0x387   : > { %v5667_v39 = vpack.c.bf16 %v4574_v49, %v4574_v49 }
 0x389   : > { %1702 = vxpose.xlu0.c.b16.start.end [1/1] (short) (narrow) %v5667_v39, 16 }
 0x38b   : > { %v1462_v33 = vpop.f32.mrb[36].mxu0 }
 0x38c   : > { %4577 = vtanh.f32 %v1462_v33  ;;  %v4272_v46 = vpop.f32.mrb[37].mxu0 }
 0x38d   : > { %v1465_v52 = vpop.f32.mrb[38].mxu0 }
 0x38e   : > { %v4576_v58 = vpop.eup %4575  ;;  %v4273_v5 = vpop.f32.mrb[39].mxu0 }
 0x38f   : > { %v5670_v6 = vpack.c.bf16 %v4576_v58, %v4576_v58 }
 0x391   : > { %1767 = vxpose.xlu0.c.b16.start.end [1/1] (short) (narrow) %v5670_v6, 16 }
 0x393   : > { %v1502_v21 = vpop.f32.mrb[36].mxu1 }
 0x394   : > { %4579 = vtanh.f32 %v1502_v21  ;;  %v4278_v13 = vpop.f32.mrb[37].mxu1 }
 0x395   : > { %v1505_v28 = vpop.f32.mrb[38].mxu1 }
 0x396   : > { %v4578_v14 = vpop.eup %4577  ;;  %v4279_v20 = vpop.f32.mrb[39].mxu1 }
 0x397   : > { %v5673_v22 = vpack.c.bf16 %v4578_v14, %v4578_v14 }
 0x399   : > { %1830 = vxpose.xlu1.c.b16.start.end [1/1] (short) (narrow) %v5673_v22, 16 }
 0x39b   : > { %v1542_v49 = vpop.f32.mrb[40].mxu0 }
 0x39c   : > { %4581 = vtanh.f32 %v1542_v49  ;;  %v4284_v1 = vpop.f32.mrb[41].mxu0 }
 0x39d   : > { %v1545_v33 = vpop.f32.mrb[42].mxu0 }
 0x39e   : > { %v4580_v46 = vpop.eup %4579  ;;  %v4285_v5 = vpop.f32.mrb[43].mxu0 }
 0x39f   : > { %v5676_v52 = vpack.c.bf16 %v4580_v46, %v4580_v46 }
 0x3a1   : > { %1893 = vxpose.xlu1.c.b16.start.end [1/1] (short) (narrow) %v5676_v52, 16 }
 0x3a3   : > { %v1582_v58 = vpop.f32.mrb[40].mxu1 }
 0x3a4   : > { %4583 = vtanh.f32 %v1582_v58  ;;  %v4290_v21 = vpop.f32.mrb[41].mxu1 }
 0x3a5   : > { %v1585_v13 = vpop.f32.mrb[42].mxu1 }
 0x3a6   : > { %v4582_v28 = vpop.eup %4581  ;;  %v4291_v20 = vpop.f32.mrb[43].mxu1 }
 0x3a7   : > { %v5679_v14 = vpack.c.bf16 %v4582_v28, %v4582_v28 }
 0x3a9   : > { %1956 = vxpose.xlu0.c.b16.start.end [1/1] (short) (narrow) %v5679_v14, 16 }
 0x3ab   : > { %v1622_v60 = vpop.f32.mrb[44].mxu0 }
 0x3ac   : > { %4585 = vtanh.f32 %v1622_v60  ;;  %v4296_v49 = vpop.f32.mrb[45].mxu0 }
 0x3ad   : > { %v1625_v1 = vpop.f32.mrb[46].mxu0 }
 0x3ae   : > { %v4584_v33 = vpop.eup %4583  ;;  %v4297_v5 = vpop.f32.mrb[47].mxu0 }
 0x3af   : > { %v5682_v46 = vpack.c.bf16 %v4584_v33, %v4584_v33  ;;  %v1696_v5 = vpack.c.bf16 %v5536_v12, %v5536_v12 }
 0x3b1   : > { %2019 = vxpose.xlu1.c.b16.start.end [1/1] (short) (narrow) %v5682_v46, 16 }
 0x3b3   : > { %v1662_v61 = vpop.f32.mrb[44].mxu1 }
 0x3b4   : > { %4587 = vtanh.f32 %v1662_v61  ;;  %v4302_v58 = vpop.f32.mrb[45].mxu1  ;;  %v1694_v61 = vpack.c.bf16 %v5524_v0, %v5524_v0 }
 0x3b5   : > { %v1665_v21 = vpop.f32.mrb[46].mxu1 }
 0x3b6   : > { %v4586_v13 = vpop.eup %4585  ;;  %v4303_v20 = vpop.f32.mrb[47].mxu1  ;;  %v1850_v1 = vsel %vm1722_vm1, %v1694_v61, 0  ;;  %v1976_v21 = vsel %vm1722_vm1, %v1696_v5, 0 }
 0x3b7   : > { %v5685_v28 = vpack.c.bf16 %v4586_v13, %v4586_v13  ;;  %v1697_v13 = vpack.c.bf16 %v5539_v18, %v5539_v18 }
 0x3b9   : > { %2082 = vxpose.xlu0.c.b16.start.end [1/1] (short) (narrow) %v5685_v28, 16  ;;  %v2039_v61 = vsel %vm1722_vm1, %v1697_v13, 0 }
 0x3be   : > { %v4588_v51 = vpop.eup %4587 }
 0x3bf   : > { %v5688_v60 = vpack.c.bf16 %v4588_v51, %v4588_v51  ;;  %v1695_v51 = vpack.c.bf16 %v5529_v4, %v5529_v4 }
 0x3c1   : > { %2145 = vxpose.xlu1.c.b16.start.end [1/1] (short) (narrow) %v5688_v60, 16 }
 0x3c2   : > { %4499 = vset.pattern.permute.xlu0 %v5014_v44 }
 0x3c5   : > { %4500 = vset.pattern.permute.xlu1 %v5014_v44  ;;  %v1913_v44 = vsel %vm1722_vm1, %v1695_v51, 0 }
 0x3ef   : > { %v1710_v49 = vpop.trf.xlu0 }
 0x3f0   : > { %4307 = vmatmul.mubr.msk.bf16.vlgmr.msra.gmra.mrb[48].mxu0 %vm1718_vm2, %v1710_v49  ;;  %v1698_v49 = vpack.c.bf16 %v5546_v25, %v5546_v25 }
 0x3f1   : > { %4317 = vmatpush3.bf16.msra.mxu0 %v1850_v1  ;;  %4318 = vmatprep.mubr.msk.bf16.mxu0 %vm5016_vm0, %v5015_v47 }
 0x3f2   : > { %4328 = vmatprep.subr.bf16.mxu0 %v5015_v47  ;;  %v2102_v51 = vsel %vm1722_vm1, %v1698_v49, 0 }
 0x3f7   : > { %v1775_v33 = vpop.trf.xlu0 }
 0x3f8   : > { %4313 = vmatmul.mubr.msk.bf16.vlgmr.msra.gmra.mrb[48].mxu1 %vm1718_vm2, %v1775_v33  ;;  %v1699_v33 = vpack.c.bf16 %v5549_v32, %v5549_v32 }
 0x3f9   : > { %4323 = vmatpush3.bf16.msra.mxu1 %v1913_v44  ;;  %4324 = vmatprep.mubr.msk.bf16.mxu1 %vm5016_vm0, %v5015_v47 }
 0x3fa   : > { %4334 = vmatprep.subr.bf16.mxu1 %v5015_v47  ;;  %v2165_v5 = vsel %vm1722_vm1, %v1699_v33, 0 }
 0x3ff   : > { %v1838_v58 = vpop.trf.xlu1 }
 0x400   : > { %4319 = vmatmul.mubr.msk.bf16.vlgmr.msra.gmra.mrb[52].mxu0 %vm1718_vm2, %v1838_v58  ;;  %v931_v58 = vrot.slane %v5557_v42, %v5515_v55 }
 0x401   : > { %4329 = vmatpush3.bf16.msra.mxu0 %v1976_v21  ;;  %4330 = vmatprep.mubr.msk.bf16.mxu0 %vm5016_vm0, %v5015_v47 }
 0x402   : > { %4340 = vmatprep.subr.bf16.mxu0 %v5015_v47  ;;  %v5738_v21 = vadd.f32 %v5570_v45, %v931_v58  ;;  %v1051_v13 = vadd.f32 %v5563_v3, %v931_v58  ;;  %v5747_v42 = vadd.f32 %v5578_v63, %v931_v58  ;;  %v5750_v49 = vadd.f32 %v5588_v24, %v931_v58 }
 0x403   : > { %v1061_v45 = vadd.f32 %v5574_v34, %v931_v58  ;;  %v5754_v3 = vadd.f32 %v5584_v48, %v931_v58  ;;  %v5767_v24 = vadd.f32 %v5598_v23, %v931_v58  ;;  %v5770_v34 = vadd.f32 %v5609_v43, %v931_v58 }
 0x404   : > { %v5775_v63 = vadd.f32 %v5594_v57, %v931_v58  ;;  %v5778_v48 = vadd.f32 %v5605_v29, %v931_v58  ;;  %v5793_v57 = vadd.f32 %v5620_v50, %v931_v58  ;;  %v5796_v29 = vadd.f32 %v5631_v15, %v931_v58 }
 0x405   : > { %v5801_v43 = vadd.f32 %v5616_v38, %v931_v58  ;;  %v5819_v38 = vadd.f32 %v5648_v19, %v931_v58 }
 0x406   : > { %v1688_v23 = vpack.c.bf16 %v5770_v34, %v5778_v48 }
 0x407   : > { %v1901_v20 = vpop.trf.xlu1 }
 0x408   : > { %4325 = vmatmul.mubr.msk.bf16.vlgmr.msra.gmra.mrb[52].mxu1 %vm1718_vm2, %v1901_v20  ;;  %v1684_v20 = vpack.c.bf16 %v5738_v21, %v1051_v13 }
 0x409   : > { %4335 = vmatpush3.bf16.msra.mxu1 %v2039_v61  ;;  %4336 = vmatprep.mubr.msk.bf16.mxu1 %vm5016_vm0, %v5015_v47 }
 0x40a   : > { %4346 = vmatprep.subr.bf16.mxu1 %v5015_v47 }
 0x40f   : > { %v1964_v1 = vpop.trf.xlu0 }
 0x410   : > { %4331 = vmatmul.mubr.msk.bf16.vlgmr.msra.gmra.mrb[56].mxu0 %vm1718_vm2, %v1964_v1  ;;  %v1685_v1 = vpack.c.bf16 %v5747_v42, %v1061_v45 }
 0x411   : > { %4341 = vmatpush3.bf16.msra.mxu0 %v2102_v51  ;;  %4342 = vmatprep.mubr.msk.bf16.mxu0 %vm5016_vm0, %v5015_v47  ;;  %v1686_v51 = vpack.c.bf16 %v5750_v49, %v5754_v3 }
 0x412   : > { %4352 = vmatprep.subr.bf16.mxu0 %v5015_v47 }
 0x417   : > { %v2027_v44 = vpop.trf.xlu1 }
 0x418   : > { %4337 = vmatmul.mubr.msk.bf16.vlgmr.msra.gmra.mrb[56].mxu1 %vm1718_vm2, %v2027_v44 }
 0x419   : > { %4347 = vmatpush3.bf16.msra.mxu1 %v2165_v5  ;;  %4348 = vmatprep.mubr.msk.bf16.mxu1 %vm5016_vm0, %v5015_v47 }
 0x41a   : > { %4358 = vmatprep.subr.bf16.mxu1 %v5015_v47 }
 0x41f   : > { %v2090_v61 = vpop.trf.xlu0 }
 0x420   : > { %4343 = vmatmul.mubr.msk.bf16.vlgmr.msra.gmra.mrb[60].mxu0 %vm1718_vm2, %v2090_v61 }
 0x421   : > { %4353 = vmatpush3.bf16.msra.mxu0 %v1684_v20  ;;  %4354 = vmatprep.mubr.msk.bf16.mxu0 %vm5016_vm0, %v5015_v47 }
 0x422   : > { %4364 = vmatprep.subr.bf16.mxu0 %v5015_v47 }
 0x427   : > { %v2153_v33 = vpop.trf.xlu1 }
 0x428   : > { %4349 = vmatmul.mubr.msk.bf16.vlgmr.msra.gmra.mrb[60].mxu1 %vm1718_vm2, %v2153_v33  ;;  %4355 = vmatmul.mubr.msk.bf16.vlgmr.msra.gmra.mrb[64].mxu0 %vm2419_vm3, %v5667_v39  ;;  %v1687_v39 = vpack.c.bf16 %v5767_v24, %v5775_v63 }
 0x429   : > { %4359 = vmatpush3.bf16.msra.mxu1 %v1685_v1  ;;  %4365 = vmatpush3.bf16.msra.mxu0 %v1686_v51 }
 0x42a   : > { %4360 = vmatprep.mubr.msk.bf16.mxu1 %vm5016_vm0, %v5015_v47  ;;  %4366 = vmatprep.mubr.msk.bf16.mxu0 %vm5016_vm0, %v5015_v47 }
 0x42b   : > { %4370 = vmatprep.subr.bf16.mxu1 %v5015_v47  ;;  %4376 = vmatprep.subr.bf16.mxu0 %v5015_v47 }
 0x430   : > { %4361 = vmatmul.mubr.msk.bf16.vlgmr.msra.gmra.mrb[64].mxu1 %vm2419_vm3, %v5670_v6  ;;  %4367 = vmatmul.mubr.msk.bf16.vlgmr.msra.gmra.mrb[68].mxu0 %vm2419_vm3, %v5673_v22  ;;  %v5804_v6 = vadd.f32 %v5627_v10, %v931_v58  ;;  %v1689_v22 = vpack.c.bf16 %v5793_v57, %v5801_v43  ;;  %v5823_v10 = vadd.f32 %v5642_v7, %v931_v58 }
 0x431   : > { %4371 = vmatpush3.bf16.msra.mxu1 %v1687_v39  ;;  %4377 = vmatpush3.bf16.msra.mxu0 %v1688_v23 }
 0x432   : > { %4372 = vmatprep.mubr.msk.bf16.mxu1 %vm5016_vm0, %v5015_v47  ;;  %4378 = vmatprep.mubr.msk.bf16.mxu0 %vm5016_vm0, %v5015_v47  ;;  %v1690_v50 = vpack.c.bf16 %v5796_v29, %v5804_v6  ;;  %v1691_v15 = vpack.c.bf16 %v5819_v38, %v5823_v10 }
 0x433   : > { %4382 = vmatprep.subr.bf16.mxu1 %v5015_v47  ;;  %4388 = vmatprep.subr.bf16.mxu0 %v5015_v47 }
 0x438   : > { %4373 = vmatmul.mubr.msk.bf16.vlgmr.msra.gmra.mrb[68].mxu1 %vm2419_vm3, %v5676_v52  ;;  %4379 = vmatmul.mubr.msk.bf16.vlgmr.msra.gmra.mrb[72].mxu0 %vm2419_vm3, %v5679_v14 }
 0x439   : > { %4383 = vmatpush3.bf16.msra.mxu1 %v1689_v22  ;;  %4389 = vmatpush3.bf16.msra.mxu0 %v1690_v50 }
 0x43a   : > { %4384 = vmatprep.mubr.msk.bf16.mxu1 %vm5016_vm0, %v5015_v47  ;;  %4390 = vmatprep.mubr.msk.bf16.mxu0 %vm5016_vm0, %v5015_v47 }
 0x43b   : > { %4394 = vmatprep.subr.bf16.mxu1 %v5015_v47 }
 0x440   : > { %4385 = vmatmul.mubr.msk.bf16.vlgmr.msra.gmra.mrb[72].mxu1 %vm2419_vm3, %v5682_v46  ;;  %4391 = vmatmul.mubr.msk.bf16.vlgmr.msra.gmra.mrb[76].mxu0 %vm2419_vm3, %v5685_v28 }
 0x441   : > { %4395 = vmatpush3.bf16.msra.mxu1 %v1691_v15  ;;  %4396 = vmatprep.mubr.msk.bf16.mxu1 %vm5016_vm0, %v5015_v47  ;;  %v5840_v47 = vld [vmem:[%s6527_s8] ss:$0 sm:$0xff] }
 0x448   : > { %4397 = vmatmul.mubr.msk.bf16.vlgmr.msra.gmra.mrb[76].mxu1 %vm2419_vm3, %v5688_v60 }
 0x4c3   : > { %v1760_v19 = vpop.f32.mrb[48].mxu0 }
 0x4c4   : > { %v2208_v52 = vadd.f32 %v1760_v19, %v1051_v13  ;;  %v4308_v7 = vpop.f32.mrb[49].mxu0 }
 0x4c5   : > { %v1763_v14 = vpop.f32.mrb[50].mxu0 }
 0x4c6   : > { %4589 = vtanh.f32 %v2208_v52  ;;  %v2209_v44 = vadd.f32 %v1763_v14, %v5738_v21  ;;  %v4309_v5 = vpop.f32.mrb[51].mxu0 }
 0x4c8   : > { %4591 = vtanh.f32 %v2209_v44 }
 0x4cb   : > { %v1823_v46 = vpop.f32.mrb[48].mxu1 }
 0x4cc   : > { %v2210_v58 = vadd.f32 %v1823_v46, %v1061_v45  ;;  %v4314_v20 = vpop.f32.mrb[49].mxu1 }
 0x4cd   : > { %v1826_v28 = vpop.f32.mrb[50].mxu1 }
 0x4ce   : > { %4593 = vtanh.f32 %v2210_v58  ;;  %v2211_v61 = vadd.f32 %v1826_v28, %v5747_v42  ;;  %v4315_v60 = vpop.f32.mrb[51].mxu1 }
 0x4d0   : > { %v4590_v13 = vpop.eup %4589  ;;  %4595 = vtanh.f32 %v2211_v61 }
 0x4d1   : > { %v2246_v1 = vmul.f32 %v4590_v13, %v5840_v47 }
 0x4d2   : > { %v4592_v21 = vpop.eup %4591 }
 0x4d3   : > { %2262 = vadd.xlane.f32.xlu0 %v2246_v1  ;;  %v1886_v51 = vpop.f32.mrb[52].mxu0  ;;  %v2247_v45 = vmul.f32 %v4592_v21, %v5840_v47 }
 0x4d4   : > { %v2212_v33 = vadd.f32 %v1886_v51, %v5754_v3  ;;  %v4320_v39 = vpop.f32.mrb[53].mxu0 }
 0x4d5   : > { %2264 = vadd.xlane.f32.xlu1 %v2247_v45  ;;  %v1889_v42 = vpop.f32.mrb[54].mxu0 }
 0x4d6   : > { %4597 = vtanh.f32 %v2212_v33  ;;  %v2213_v23 = vadd.f32 %v1889_v42, %v5750_v49  ;;  %v4321_v22 = vpop.f32.mrb[55].mxu0 }
 0x4d8   : > { %v4594_v50 = vpop.eup %4593  ;;  %4599 = vtanh.f32 %v2213_v23 }
 0x4d9   : > { %v2248_v15 = vmul.f32 %v4594_v50, %v5840_v47 }
 0x4da   : > { %v4596_v19 = vpop.eup %4595 }
 0x4db   : > { %v1949_v52 = vpop.f32.mrb[52].mxu1  ;;  %2266 = vadd.xlane.f32.xlu0 %v2248_v15  ;;  %v2249_v7 = vmul.f32 %v4596_v19, %v5840_v47 }
 0x4dc   : > { %v2214_v14 = vadd.f32 %v1949_v52, %v5775_v63  ;;  %v4326_v44 = vpop.f32.mrb[53].mxu1 }
 0x4dd   : > { %v1952_v3 = vpop.f32.mrb[54].mxu1  ;;  %2268 = vadd.xlane.f32.xlu1 %v2249_v7 }
 0x4de   : > { %4601 = vtanh.f32 %v2214_v14  ;;  %v2215_v5 = vadd.f32 %v1952_v3, %v5767_v24  ;;  %v4327_v46 = vpop.f32.mrb[55].mxu1 }
 0x4e0   : > { %v4598_v49 = vpop.eup %4597  ;;  %4603 = vtanh.f32 %v2215_v5 }
 0x4e1   : > { %v2250_v58 = vmul.f32 %v4598_v49, %v5840_v47 }
 0x4e2   : > { %v4600_v20 = vpop.eup %4599 }
 0x4e3   : > { %2270 = vadd.xlane.f32.xlu0 %v2250_v58  ;;  %v2012_v28 = vpop.f32.mrb[56].mxu0  ;;  %v2251_v61 = vmul.f32 %v4600_v20, %v5840_v47 }
 0x4e4   : > { %v2216_v60 = vadd.f32 %v2012_v28, %v5778_v48  ;;  %v4332_v13 = vpop.f32.mrb[57].mxu0 }
 0x4e5   : > { %2272 = vadd.xlane.f32.xlu1 %v2251_v61  ;;  %v2015_v63 = vpop.f32.mrb[58].mxu0 }
 0x4e6   : > { %4605 = vtanh.f32 %v2216_v60  ;;  %v2217_v1 = vadd.f32 %v2015_v63, %v5770_v34  ;;  %v4333_v21 = vpop.f32.mrb[59].mxu0 }
 0x4e8   : > { %v4602_v24 = vpop.eup %4601  ;;  %4607 = vtanh.f32 %v2217_v1 }
 0x4e9   : > { %v2252_v51 = vmul.f32 %v4602_v24, %v5840_v47 }
 0x4ea   : > { %v4604_v45 = vpop.eup %4603 }
 0x4eb   : > { %v2075_v33 = vpop.f32.mrb[56].mxu1  ;;  %2274 = vadd.xlane.f32.xlu0 %v2252_v51  ;;  %v2253_v39 = vmul.f32 %v4604_v45, %v5840_v47 }
 0x4ec   : > { %v2218_v42 = vadd.f32 %v2075_v33, %v5801_v43  ;;  %v4338_v23 = vpop.f32.mrb[57].mxu1 }
 0x4ed   : > { %v2078_v48 = vpop.f32.mrb[58].mxu1  ;;  %2276 = vadd.xlane.f32.xlu1 %v2253_v39 }
 0x4ee   : > { %4609 = vtanh.f32 %v2218_v42  ;;  %v2219_v22 = vadd.f32 %v2078_v48, %v5793_v57  ;;  %v4339_v50 = vpop.f32.mrb[59].mxu1 }
 0x4f0   : > { %v4606_v34 = vpop.eup %4605  ;;  %4611 = vtanh.f32 %v2219_v22 }
 0x4f1   : > { %v2254_v15 = vmul.f32 %v4606_v34, %v5840_v47 }
 0x4f2   : > { %v4608_v19 = vpop.eup %4607 }
 0x4f3   : > { %2278 = vadd.xlane.f32.xlu0 %v2254_v15  ;;  %v2138_v52 = vpop.f32.mrb[60].mxu0  ;;  %v2255_v7 = vmul.f32 %v4608_v19, %v5840_v47  ;;  %v4140_v19 = vld [vmem:[%s6623_s17] ss:$0 sm:$0xff]  ;;  %s6399_s17 = scalar_lea.hbm %s6655_s20, %s6382_s26 }
 0x4f4   : > { %v2220_v14 = vadd.f32 %v2138_v52, %v5804_v6  ;;  %v4344_v44 = vpop.f32.mrb[61].mxu0 }
 0x4f5   : > { %2280 = vadd.xlane.f32.xlu1 %v2255_v7  ;;  %v2141_v43 = vpop.f32.mrb[62].mxu0 }
 0x4f6   : > { %4613 = vtanh.f32 %v2220_v14  ;;  %v2221_v3 = vadd.f32 %v2141_v43, %v5796_v29  ;;  %v4345_v5 = vpop.f32.mrb[63].mxu0 }
 0x4f8   : > { %v4610_v57 = vpop.eup %4609  ;;  %4615 = vtanh.f32 %v2221_v3 }
 0x4f9   : > { %v2256_v46 = vmul.f32 %v4610_v57, %v5840_v47 }
 0x4fa   : > { %v4612_v49 = vpop.eup %4611 }
 0x4fb   : > { %v2201_v58 = vpop.f32.mrb[60].mxu1  ;;  %2282 = vadd.xlane.f32.xlu0 %v2256_v46  ;;  %v3011_v20 = vpop.f32.mrb[64].mxu0  ;;  %v2257_v28 = vmul.f32 %v4612_v49, %v5840_v47 }
 0x4fc   : > { %v3318_v61 = vadd.f32 %v3011_v20, %v5635_v11  ;;  %v4350_v6 = vpop.f32.mrb[61].mxu1  ;;  %v4356_v60 = vpop.f32.mrb[65].mxu0  ;;  %v2222_v13 = vadd.f32 %v2201_v58, %v5823_v10 }
 0x4fd   : > { %v2204_v63 = vpop.f32.mrb[62].mxu1  ;;  %2284 = vadd.xlane.f32.xlu1 %v2257_v28  ;;  %v3014_v29 = vpop.f32.mrb[66].mxu0 }
 0x4fe   : > { %v2223_v1 = vadd.f32 %v2204_v63, %v5819_v38  ;;  %v4357_v21 = vpop.f32.mrb[67].mxu0  ;;  %v4351_v24 = vpop.f32.mrb[63].mxu1  ;;  %4617 = vtanh.f32 %v3318_v61 }
 0x500   : > { %v4614_v51 = vpop.eup %4613  ;;  %4619 = vtanh.f32 %v2223_v1 }
 0x501   : > { %4621 = vtanh.f32 %v2222_v13  ;;  %v2258_v45 = vmul.f32 %v4614_v51, %v5840_v47 }
 0x502   : > { %v4616_v33 = vpop.eup %4615 }
 0x503   : > { %v3054_v39 = vpop.f32.mrb[64].mxu1  ;;  %2286 = vadd.xlane.f32.xlu1 %v2258_v45  ;;  %v3097_v11 = vpop.f32.mrb[68].mxu0  ;;  %v2259_v42 = vmul.f32 %v4616_v33, %v5840_v47 }
 0x504   : > { %v3319_v10 = vadd.f32 %v3054_v39, %v5652_v54  ;;  %v3320_v23 = vadd.f32 %v3097_v11, %v5524_v0  ;;  %v4362_v48 = vpop.f32.mrb[65].mxu1  ;;  %v4368_v38 = vpop.f32.mrb[69].mxu0 }
 0x505   : > { %v3057_v22 = vpop.f32.mrb[66].mxu1  ;;  %2288 = vadd.xlane.f32.xlu0 %v2259_v42  ;;  %v3100_v50 = vpop.f32.mrb[70].mxu0 }
 0x506   : > { %4623 = vtanh.f32 %v3319_v10  ;;  %v4363_v34 = vpop.f32.mrb[67].mxu1  ;;  %v4369_v15 = vpop.f32.mrb[71].mxu0 }
 0x507   : > { %4625 = vtanh.f32 %v3320_v23 }
 0x508   : > { %v4618_v52 = vpop.eup %4617 }
 0x509   : > { %v3340_v14 = vmul.f32 %v4618_v52, %v4140_v19 }
 0x50a   : > { %v4620_v7 = vpop.eup %4619 }
 0x50b   : > { %v4622_v44 = vpop.eup %4621  ;;  %v3140_v54 = vpop.f32.mrb[68].mxu1  ;;  %v2261_v0 = vmul.f32 %v4620_v7, %v5840_v47  ;;  %3348 = vadd.xlane.f32.xlu0 %v3340_v14 }
 0x50c   : > { %v3183_v43 = vpop.f32.mrb[72].mxu0  ;;  %v3321_v3 = vadd.f32 %v3140_v54, %v5529_v4  ;;  %v4374_v57 = vpop.f32.mrb[69].mxu1  ;;  %v2260_v61 = vmul.f32 %v4622_v44, %v5840_v47 }
 0x50d   : > { %v3322_v5 = vadd.f32 %v3183_v43, %v5536_v12  ;;  %v4380_v46 = vpop.f32.mrb[73].mxu0  ;;  %v3143_v49 = vpop.f32.mrb[70].mxu1  ;;  %2292 = vadd.xlane.f32.xlu1 %v2261_v0  ;;  %v6624_v57 = vlaneseq }
 0x50e   : > { %v3186_v58 = vpop.f32.mrb[74].mxu0  ;;  %4627 = vtanh.f32 %v3321_v3  ;;  %v4375_v20 = vpop.f32.mrb[71].mxu1 }
 0x50f   : > { %v4381_v28 = vpop.f32.mrb[75].mxu0  ;;  %4629 = vtanh.f32 %v3322_v5  ;;  %2290 = vadd.xlane.f32.xlu0 %v2260_v61  ;;  %v2329_v46 = vand.u32 127, %v6624_v57  ;;  %v2295_v61 = vstv %s2294_s9  ;;  %s3777_s9 = scalar_lea.sflag [#allocation6], %s5348_s6 }
 0x510   : > { %v4624_v6 = vpop.eup %4623 }
 0x511   : > { %v4626_v60 = vpop.eup %4625  ;;  %v3341_v13 = vmul.f32 %v4624_v6, %v4140_v19  ;;  %v2334_v20 = vadd.s32 4294967288, %v2329_v46 }
 0x512   : > { %v3342_v63 = vmul.f32 %v4626_v60, %v4140_v19 }
 0x513   : > { %v3226_v4 = vpop.f32.mrb[72].mxu1  ;;  %3350 = vadd.xlane.f32.xlu1 %v3341_v13  ;;  %v3269_v29 = vpop.f32.mrb[76].mxu0  ;;  %v5887_v13 = vsub.s32 %v2334_v20, %v5512_v53 }
 0x514   : > { %v3323_v12 = vadd.f32 %v3226_v4, %v5539_v18  ;;  %3352 = vadd.xlane.f32.xlu0 %v3342_v63  ;;  %v3324_v1 = vadd.f32 %v3269_v29, %v5546_v25  ;;  %v4386_v21 = vpop.f32.mrb[73].mxu1  ;;  %v4392_v24 = vpop.f32.mrb[77].mxu0 }
 0x515   : > { %v3229_v51 = vpop.f32.mrb[74].mxu1  ;;  %v3272_v45 = vpop.f32.mrb[78].mxu0 }
 0x516   : > { %4631 = vtanh.f32 %v3323_v12  ;;  %v4387_v47 = vpop.f32.mrb[75].mxu1  ;;  %v4393_v33 = vpop.f32.mrb[79].mxu0 }
 0x517   : > { %4633 = vtanh.f32 %v3324_v1  ;;  %v5896_v1 = vsub.s32 %v2329_v46, %v5512_v53 }
 0x518   : > { %v4628_v39 = vpop.eup %4627 }
 0x519   : > { %v4630_v11 = vpop.eup %4629  ;;  %v3343_v42 = vmul.f32 %v4628_v39, %v4140_v19 }
 0x51a   : > { %v3344_v10 = vmul.f32 %v4630_v11, %v4140_v19 }
 0x51b   : > { %v3312_v23 = vpop.f32.mrb[76].mxu1  ;;  %3354 = vadd.xlane.f32.xlu1 %v3343_v42 }
 0x51c   : > { %v3325_v48 = vadd.f32 %v3312_v23, %v5549_v32  ;;  %3356 = vadd.xlane.f32.xlu0 %v3344_v10  ;;  %v4398_v18 = vpop.f32.mrb[77].mxu1 }
 0x51d   : > { %v3315_v38 = vpop.f32.mrb[78].mxu1 }
 0x51e   : > { %4635 = vtanh.f32 %v3325_v48  ;;  %v4399_v25 = vpop.f32.mrb[79].mxu1 }
 0x520   : > { %v4632_v22 = vpop.eup %4631 }
 0x521   : > { %v4634_v50 = vpop.eup %4633  ;;  %v3345_v34 = vmul.f32 %v4632_v22, %v4140_v19 }
 0x522   : > { %v3346_v15 = vmul.f32 %v4634_v50, %v4140_v19 }
 0x523   : > { %3358 = vadd.xlane.f32.xlu1 %v3345_v34 }
 0x524   : > { %3360 = vadd.xlane.f32.xlu0 %v3346_v15 }
 0x528   : > { %v4636_v52 = vpop.eup %4635 }
 0x529   : > { %v3347_v7 = vmul.f32 %v4636_v52, %v4140_v19 }
 0x52b   : > { %3362 = vadd.xlane.f32.xlu1 %v3347_v7 }
 0x560   : > { %v2263_v14 = vpop.xlane.xlu0 %2262 }
 0x561   : > { %v5902_v51 = vadd.f32 %v2295_v61, %v2263_v14 }
 0x562   : > { %v2265_v44 = vpop.xlane.xlu1 %2264 }
 0x563   : > { %v5889_v63 = vadd.f32 %v2295_v61, %v2265_v44  ;;  %v2333_v15 = vrot.slane %v5902_v51, %v5896_v1 }
 0x565   : > { %v2338_v23 = vrot.slane %v5889_v63, %v5887_v13 }
 0x568   : > { %v2267_v54 = vpop.xlane.xlu0 %2266 }
 0x569   : > { %v5891_v4 = vadd.f32 %v2295_v61, %v2267_v54 }
 0x56a   : > { %v2269_v43 = vpop.xlane.xlu1 %2268 }
 0x56b   : > { %v5882_v6 = vadd.f32 %v2295_v61, %v2269_v43  ;;  %v2344_v48 = vrot.slane %v5891_v4, %v5896_v1 }
 0x56d   : > { %v2348_v45 = vrot.slane %v5882_v6, %v5887_v13 }
 0x56f   : > { %v2349_v52 = vsel %vm2339_vm4, %v2348_v45, %v2344_v48 }
 0x570   : > { %v2271_v0 = vpop.xlane.xlu0 %2270 }
 0x571   : > { %v5898_v21 = vadd.f32 %v2295_v61, %v2271_v0 }
 0x572   : > { %v2273_v32 = vpop.xlane.xlu1 %2272 }
 0x573   : > { %v5884_v60 = vadd.f32 %v2295_v61, %v2273_v32  ;;  %v2353_v25 = vrot.slane %v5898_v21, %v5896_v1  ;;  %v2340_v32 = vsel %vm2339_vm4, %v2338_v23, %v2333_v15 }
 0x574   : > { %v2405_v46 = vsel %vm2404_vm5, %v2349_v52, %v2340_v32 }
 0x575   : > { %v2357_v11 = vrot.slane %v5884_v60, %v5887_v13 }
 0x577   : > { %v2358_v54 = vsel %vm2339_vm4, %v2357_v11, %v2353_v25 }
 0x578   : > { %v2275_v3 = vpop.xlane.xlu0 %2274 }
 0x579   : > { %v5906_v47 = vadd.f32 %v2295_v61, %v2275_v3 }
 0x57a   : > { %v2277_v5 = vpop.xlane.xlu1 %2276 }
 0x57b   : > { %v5893_v29 = vadd.f32 %v2295_v61, %v2277_v5  ;;  %v2362_v7 = vrot.slane %v5906_v47, %v5896_v1 }
 0x57d   : > { %v2366_v18 = vrot.slane %v5893_v29, %v5887_v13 }
 0x57f   : > { %v2367_v3 = vsel %vm2339_vm4, %v2366_v18, %v2362_v7  ;;  %v3365_v7 = vstv %s3364_s14  ;;  %s4865_s14 = scalar_lea.vmem %s6401_s13, 128 }
 0x580   : > { %v2279_v49 = vpop.xlane.xlu0 %2278  ;;  %p4866_p4 = scmp.ne.s32.totalorder %s6401_s13, %s4865_s14 }
 0x581   : > { %v5912_v42 = vadd.f32 %v2295_v61, %v2279_v49 }
 0x582   : > { %v2281_v58 = vpop.xlane.xlu1 %2280  ;;  %p4867_p0 = pnand %p4866_p4, %p5253_p5 }
 0x583   : > { %v5900_v24 = vadd.f32 %v2295_v61, %v2281_v58  ;;  %v2371_v43 = vrot.slane %v5912_v42, %v5896_v1 }
 0x584   : > { %p4868_p8 = pneg %p4867_p0 }
 0x585   : > { %v2375_v22 = vrot.slane %v5900_v24, %v5887_v13 }
 0x587   : > { %v2376_v49 = vsel %vm2339_vm4, %v2375_v22, %v2371_v43 }
 0x588   : > { %v2283_v28 = vpop.xlane.xlu0 %2282 }
 0x589   : > { %v5922_v38 = vadd.f32 %v2295_v61, %v2283_v28  ;;  %v2407_v28 = vsel %vm2406_vm6, %v2358_v54, %v2405_v46 }
 0x58a   : > { %v2285_v19 = vpop.xlane.xlu1 %2284  ;;  %v2409_v45 = vsel %vm2408_vm7, %v2367_v3, %v2407_v28 }
 0x58b   : > { %v5908_v33 = vadd.f32 %v2295_v61, %v2285_v19  ;;  %v2380_v5 = vrot.slane %v5922_v38, %v5896_v1  ;;  %v2411_v48 = vsel %vm2410_vm8, %v2376_v49, %v2409_v45 }
 0x58d   : > { %v2384_v14 = vrot.slane %v5908_v33, %v5887_v13 }
 0x58f   : > { %v2385_v19 = vsel %vm2339_vm4, %v2384_v14, %v2380_v5 }
 0x590   : > { %v2287_v39 = vpop.xlane.xlu1 %2286  ;;  %v2413_v18 = vsel %vm2412_vm9, %v2385_v19, %v2411_v48 }
 0x591   : > { %v5928_v50 = vadd.f32 %v2295_v61, %v2287_v39 }
 0x592   : > { %v2289_v12 = vpop.xlane.xlu0 %2288 }
 0x593   : > { %v5914_v10 = vadd.f32 %v2295_v61, %v2289_v12  ;;  %v2389_v58 = vrot.slane %v5928_v50, %v5896_v1 }
 0x595   : > { %v2393_v0 = vrot.slane %v5914_v10, %v5887_v13 }
 0x597   : > { %v2394_v39 = vsel %vm2339_vm4, %v2393_v0, %v2389_v58 }
 0x598   : > { %v3349_v34 = vpop.xlane.xlu0 %3348  ;;  %v2415_v25 = vsel %vm2414_vm10, %v2394_v39, %v2413_v18 }
 0x599   : > { %v5970_v43 = vadd.f32 %v3365_v7, %v3349_v34 }
 0x59a   : > { %v2293_v44 = vpop.xlane.xlu1 %2292 }
 0x59b   : > { %v5946_v57 = vadd.f32 %v2295_v61, %v2293_v44  ;;  %v3385_v46 = vrot.slane %v5970_v43, %v5896_v1 }
 0x59c   : > { %v2291_v20 = vpop.xlane.xlu0 %2290 }
 0x59d   : > { %v5954_v12 = vadd.f32 %v2295_v61, %v2291_v20  ;;  %v2402_v11 = vrot.slane %v5946_v57, %v5887_v13 }
 0x59f   : > { %v2398_v23 = vrot.slane %v5954_v12, %v5896_v1 }
 0x5a0   : > { %v3351_v52 = vpop.xlane.xlu1 %3350 }
 0x5a1   : > { %v2403_v61 = vsel %vm2339_vm4, %v2402_v11, %v2398_v23  ;;  %v5968_v14 = vadd.f32 %v3365_v7, %v3351_v52  ;;  %v3353_v44 = vpop.xlane.xlu0 %3352 }
 0x5a2   : > { %v2417_v22 = vsel %vm2416_vm11, %v2403_v61, %v2415_v25  ;;  %v5972_v0 = vadd.f32 %v3365_v7, %v3353_v44 }
 0x5a3   : > { %v2420_v15 = vsel %vm2419_vm3, %v2417_v22, -inf  ;;  %v3389_v32 = vrot.slane %v5968_v14, %v5896_v1 }
 0x5a4   : > { %2421 = vmax.xlane.f32.xlu0 %v2420_v15  ;;  %v3393_v49 = vrot.slane %v5972_v0, %v5896_v1 }
 0x5a5   : > { %v3414_v34 = vsel %vm2404_vm5, %v3389_v32, %v3385_v46 }
 0x5a6   : > { %v3415_v39 = vsel %vm2406_vm6, %v3393_v49, %v3414_v34 }
 0x5a8   : > { %v3355_v54 = vpop.xlane.xlu1 %3354 }
 0x5a9   : > { %v5976_v3 = vadd.f32 %v3365_v7, %v3355_v54  ;;  %v3357_v5 = vpop.xlane.xlu0 %3356 }
 0x5aa   : > { %v5982_v58 = vadd.f32 %v3365_v7, %v3357_v5 }
 0x5ab   : > { %v3397_v28 = vrot.slane %v5976_v3, %v5896_v1 }
 0x5ac   : > { %v3401_v11 = vrot.slane %v5982_v58, %v5896_v1 }
 0x5ad   : > { %v3416_v48 = vsel %vm2408_vm7, %v3397_v28, %v3415_v39  ;;  %v6019_v39 = vsub.s32 6, %v5512_v53 }
 0x5ae   : > { %v3417_v61 = vsel %vm2410_vm8, %v3401_v11, %v3416_v48 }
 0x5b0   : > { %v3359_v20 = vpop.xlane.xlu1 %3358 }
 0x5b1   : > { %v5987_v19 = vadd.f32 %v3365_v7, %v3359_v20  ;;  %v3361_v45 = vpop.xlane.xlu0 %3360  ;;  %v6010_v20 = vsub.s32 4, %v5512_v53 }
 0x5b2   : > { %v5992_v23 = vadd.f32 %v3365_v7, %v3361_v45  ;;  %v6016_v45 = vsub.s32 2, %v5512_v53 }
 0x5b3   : > { %v3405_v18 = vrot.slane %v5987_v19, %v5896_v1 }
 0x5b4   : > { %v3409_v25 = vrot.slane %v5992_v23, %v5896_v1 }
 0x5b5   : > { %v3418_v52 = vsel %vm2412_vm9, %v3405_v18, %v3417_v61 }
 0x5b6   : > { %v3419_v54 = vsel %vm2414_vm10, %v3409_v25, %v3418_v52  ;;  %v6026_v25 = vsub.s32 7, %v5512_v53 }
 0x5b8   : > { %v3363_v22 = vpop.xlane.xlu1 %3362 }
 0x5b9   : > { %v6000_v15 = vadd.f32 %v3365_v7, %v3363_v22 }
 0x5bb   : > { %v3413_v44 = vrot.slane %v6000_v15, %v5896_v1 }
 0x5bd   : > { %v3420_v32 = vsel %vm2416_vm11, %v3413_v44, %v3419_v54 }
 0x5be   : > { %v3422_v5 = vsel %vm1718_vm2, %v3420_v32, -inf }
 0x5bf   : > { %3423 = vmax.xlane.f32.xlu1 %v3422_v5 }
 0x631   : > { %v2422_v46 = vpop.xlane.xlu0 %2421 }
 0x632   : > { %v2427_v49 = vrot.slane %v2422_v46, %v5552_v35  ;;  %v2431_v7 = vrot.slane %v2422_v46, %v5515_v55  ;;  %v6022_v11 = vrot.slane %v2422_v46, %v6010_v20  ;;  %v6031_v22 = vrot.slane %v2422_v46, %v6019_v39 }
 0x633   : > { %v6040_v5 = vrot.slane %v2422_v46, %v6026_v25 }
 0x634   : > { %v2464_v34 = vsub.f32 %v5902_v51, %v2427_v49  ;;  %v2465_v28 = vsub.f32 %v5889_v63, %v2427_v49  ;;  %v2466_v48 = vsub.f32 %v5891_v4, %v2431_v7  ;;  %v2435_v51 = vrot.slane %v2422_v46, %v6016_v45 }
 0x635   : > { %v2467_v63 = vsub.f32 %v5882_v6, %v2431_v7  ;;  %v2473_v52 = vsub.f32 %v5900_v24, %v6022_v11  ;;  %v6036_v4 = vsub.s32 3, %v5512_v53  ;;  %v2477_v6 = vsub.f32 %v5914_v10, %v6031_v22 }
 0x636   : > { %v2480_v18 = vmul.f32 1.442695, %v2464_v34  ;;  %v2482_v61 = vmul.f32 1.442695, %v2465_v28  ;;  %v2484_v44 = vmul.f32 1.442695, %v2466_v48  ;;  %v2468_v54 = vsub.f32 %v5898_v21, %v2435_v51 }
 0x637   : > { %v2486_v32 = vmul.f32 1.442695, %v2467_v63  ;;  %v2498_v49 = vmul.f32 1.442695, %v2473_v52  ;;  %v2469_v7 = vsub.f32 %v5884_v60, %v2435_v51  ;;  %v2439_v34 = vrot.slane %v2422_v46, %v6036_v4 }
 0x638   : > { %4637 = vpow2.f32 %v2480_v18  ;;  %v2488_v24 = vmul.f32 1.442695, %v2468_v54  ;;  %v2478_v28 = vsub.f32 %v5954_v12, %v6040_v5  ;;  %v2506_v21 = vmul.f32 1.442695, %v2477_v6 }
 0x639   : > { %4639 = vpow2.f32 %v2482_v61  ;;  %v2490_v10 = vmul.f32 1.442695, %v2469_v7  ;;  %v2470_v60 = vsub.f32 %v5906_v47, %v2439_v34  ;;  %v6059_v12 = vsub.s32 5, %v5512_v53 }
 0x63a   : > { %4641 = vpow2.f32 %v2484_v44  ;;  %v2508_v61 = vmul.f32 1.442695, %v2478_v28  ;;  %v2471_v63 = vsub.f32 %v5893_v29, %v2439_v34 }
 0x63b   : > { %4643 = vpow2.f32 %v2486_v32  ;;  %v2492_v52 = vmul.f32 1.442695, %v2470_v60  ;;  %v2447_v7 = vrot.slane %v2422_v46, %v6059_v12 }
 0x63c   : > { %4645 = vpow2.f32 %v2498_v49  ;;  %v2494_v34 = vmul.f32 1.442695, %v2471_v63 }
 0x63d   : > { %4647 = vpow2.f32 %v2488_v24  ;;  %v2472_v24 = vsub.f32 %v5912_v42, %v6022_v11  ;;  %v2474_v42 = vsub.f32 %v5922_v38, %v2447_v7 }
 0x63e   : > { %4649 = vpow2.f32 %v2506_v21 }
 0x63f   : > { %4651 = vpow2.f32 %v2490_v10  ;;  %v2496_v46 = vmul.f32 1.442695, %v2472_v24  ;;  %v2500_v38 = vmul.f32 1.442695, %v2474_v42 }
 0x640   : > { %4653 = vpow2.f32 %v2508_v61 }
 0x641   : > { %4655 = vpow2.f32 %v2492_v52 }
 0x642   : > { %v6048_v48 = vpop.eup %4637 }
 0x643   : > { %v6050_v18 = vpop.eup %4639  ;;  %2529 = vperm.xlu0 %4499, %v6048_v48  }
 0x644   : > { %2532 = vperm.xlu1 %4500, %v6050_v18   ;;  %v6055_v51 = vpop.eup %4641 }
 0x645   : > { %v6064_v54 = vpop.eup %4643 }
 0x646   : > { %v6070_v6 = vpop.eup %4645 }
 0x647   : > { %2556 = vperm.xlu0 %4499, %v6070_v6   ;;  %v6081_v28 = vpop.eup %4647 }
 0x648   : > { %2535 = vperm.xlu1 %4500, %v6055_v51   ;;  %v6083_v10 = vpop.eup %4649 }
 0x649   : > { %v6091_v11 = vpop.eup %4651 }
 0x64a   : > { %v6093_v61 = vpop.eup %4653 }
 0x64b   : > { %2568 = vperm.xlu0 %4499, %v6083_v10  }
 0x64c   : > { %v6062_v44 = vpop.xlane.xlu1 %3423  ;;  %2538 = vperm.xlu1 %4500, %v6064_v54  }
 0x64d   : > { %v3429_v47 = vrot.slane %v6062_v44, %v5552_v35  ;;  %v3437_v32 = vrot.slane %v6062_v44, %v6016_v45  ;;  %v3441_v53 = vrot.slane %v6062_v44, %v6036_v4  ;;  %v3449_v60 = vrot.slane %v6062_v44, %v6059_v12 }
 0x64e   : > { %v3457_v63 = vrot.slane %v6062_v44, %v6026_v25  ;;  %v3453_v42 = vrot.slane %v6062_v44, %v6019_v39 }
 0x64f   : > { %v3466_v29 = vsub.f32 %v5970_v43, %v3429_v47  ;;  %v3468_v49 = vsub.f32 %v5972_v0, %v3437_v32  ;;  %v3469_v43 = vsub.f32 %v5976_v3, %v3441_v53  ;;  %v3471_v52 = vsub.f32 %v5987_v19, %v3449_v60  ;;  %2571 = vperm.xlu0 %4499, %v6093_v61   ;;  %v6101_v32 = vpop.eup %4655 }
 0x650   : > { %2541 = vperm.xlu1 %4500, %v6081_v28   ;;  %v2475_v3 = vsub.f32 %v5908_v33, %v2447_v7  ;;  %v3473_v53 = vsub.f32 %v6000_v15, %v3457_v63  ;;  %v2476_v19 = vsub.f32 %v5928_v50, %v6031_v22  ;;  %v2479_v15 = vsub.f32 %v5946_v57, %v6040_v5 }
 0x651   : > { %v3474_v21 = vmul.f32 1.442695, %v3466_v29  ;;  %v3478_v0 = vmul.f32 1.442695, %v3468_v49  ;;  %v3480_v47 = vmul.f32 1.442695, %v3469_v43  ;;  %v3433_v50 = vrot.slane %v6062_v44, %v5515_v55 }
 0x652   : > { %v3484_v29 = vmul.f32 1.442695, %v3471_v52  ;;  %v2502_v49 = vmul.f32 1.442695, %v2475_v3  ;;  %v3488_v33 = vmul.f32 1.442695, %v3473_v53  ;;  %v3445_v43 = vrot.slane %v6062_v44, %v6010_v20 }
 0x653   : > { %4657 = vpow2.f32 %v3474_v21  ;;  %v2504_v7 = vmul.f32 1.442695, %v2476_v19  ;;  %v2510_v60 = vmul.f32 1.442695, %v2479_v15  ;;  %v3467_v57 = vsub.f32 %v5968_v14, %v3433_v50 }
 0x654   : > { %4659 = vpow2.f32 %v2494_v34  ;;  %2544 = vperm.xlu1 %4500, %v6091_v11   ;;  %v3472_v14 = vsub.f32 %v5992_v23, %v3453_v42 }
 0x655   : > { %4661 = vpow2.f32 %v3478_v0  ;;  %v3476_v63 = vmul.f32 1.442695, %v3467_v57 }
 0x656   : > { %4663 = vpow2.f32 %v2496_v46  ;;  %v3470_v46 = vsub.f32 %v5982_v58, %v3445_v43  ;;  %v3486_v58 = vmul.f32 1.442695, %v3472_v14 }
 0x657   : > { %4665 = vpow2.f32 %v3480_v47 }
 0x658   : > { %2547 = vperm.xlu1 %4500, %v6101_v32   ;;  %4667 = vpow2.f32 %v2500_v38  ;;  %v3482_v3 = vmul.f32 1.442695, %v3470_v46 }
 0x659   : > { %4669 = vpow2.f32 %v3484_v29 }
 0x65a   : > { %4671 = vpow2.f32 %v2502_v49 }
 0x65b   : > { %4673 = vpow2.f32 %v3488_v33 }
 0x65c   : > { %4675 = vpow2.f32 %v2504_v7 }
 0x65d   : > { %v6107_v24 = vpop.eup %4657  ;;  %4677 = vpow2.f32 %v2510_v60 }
 0x65e   : > { %v6109_v34 = vpop.eup %4659  ;;  %3499 = vperm.xlu0 %4499, %v6107_v24   ;;  %4679 = vpow2.f32 %v3476_v63 }
 0x65f   : > { %2550 = vperm.xlu1 %4500, %v6109_v34   ;;  %v6117_v22 = vpop.eup %4661  ;;  %4681 = vpow2.f32 %v3482_v3 }
 0x660   : > { %v6119_v21 = vpop.eup %4663  ;;  %4683 = vpow2.f32 %v3486_v58 }
 0x661   : > { %v6126_v5 = vpop.eup %4665 }
 0x662   : > { %3505 = vperm.xlu0 %4499, %v6117_v22   ;;  %v6128_v0 = vpop.eup %4667 }
 0x663   : > { %2553 = vperm.xlu1 %4500, %v6119_v21   ;;  %v6135_v52 = vpop.eup %4669 }
 0x664   : > { %v6137_v47 = vpop.eup %4671 }
 0x665   : > { %v6142_v38 = vpop.eup %4673 }
 0x666   : > { %3508 = vperm.xlu0 %4499, %v6126_v5   ;;  %v6144_v53 = vpop.eup %4675 }
 0x667   : > { %2559 = vperm.xlu1 %4500, %v6128_v0   ;;  %v6148_v44 = vpop.eup %4677 }
 0x668   : > { %v6151_v29 = vpop.eup %4679 }
 0x669   : > { %v6154_v23 = vpop.eup %4681 }
 0x66a   : > { %3514 = vperm.xlu0 %4499, %v6135_v52   ;;  %v6157_v19 = vpop.eup %4683 }
 0x66b   : > { %2562 = vperm.xlu1 %4500, %v6137_v47  }
 0x66e   : > { %3520 = vperm.xlu0 %4499, %v6142_v38  }
 0x66f   : > { %2565 = vperm.xlu1 %4500, %v6144_v53  }
 0x673   : > { %2574 = vperm.xlu1 %4500, %v6148_v44  }
 0x677   : > { %3502 = vperm.xlu1 %4500, %v6151_v29  }
 0x67b   : > { %3511 = vperm.xlu1 %4500, %v6154_v23  }
 0x67f   : > { %3517 = vperm.xlu1 %4500, %v6157_v19  }
 0x6c2   : > { %v2530_v7 = vpop.permute.xlu0 %2529 }
 0x6c3   : > { %v2533_v49 = vpop.permute.xlu1 %2532  ;;  %v2579_v31 = vrot.slane %v2530_v7, %v5896_v1 }
 0x6c4   : > { %v2583_v37 = vrot.slane %v2533_v49, %v5887_v13 }
 0x6c6   : > { %v2557_v60 = vpop.permute.xlu0 %2556 }
 0x6c7   : > { %v2536_v33 = vpop.permute.xlu1 %2535  ;;  %v2619_v8 = vrot.slane %v2557_v60, %v5887_v13 }
 0x6c8   : > { %v2588_v30 = vrot.slane %v2536_v33, %v5896_v1  ;;  %v2584_v33 = vsel %vm2339_vm4, %v2583_v37, %v2579_v31 }
 0x6ca   : > { %v2569_v42 = vpop.permute.xlu0 %2568 }
 0x6cb   : > { %v2539_v15 = vpop.permute.xlu1 %2538 }
 0x6cc   : > { %v2592_v41 = vrot.slane %v2539_v15, %v5887_v13 }
 0x6ce   : > { %v2572_v63 = vpop.permute.xlu0 %2571  ;;  %v2593_v9 = vsel %vm2339_vm4, %v2592_v41, %v2588_v30  ;;  %v2637_v30 = vrot.slane %v2569_v42, %v5887_v13 }
 0x6cf   : > { %v2542_v50 = vpop.permute.xlu1 %2541  ;;  %v2642_v37 = vrot.slane %v2572_v63, %v5896_v1 }
 0x6d0   : > { %v2597_v17 = vrot.slane %v2542_v50, %v5896_v1 }
 0x6d3   : > { %v2545_v43 = vpop.permute.xlu1 %2544 }
 0x6d4   : > { %v2601_v40 = vrot.slane %v2545_v43, %v5887_v13 }
 0x6d6   : > { %v2602_v49 = vsel %vm2339_vm4, %v2601_v40, %v2597_v17 }
 0x6d7   : > { %v2548_v57 = vpop.permute.xlu1 %2547 }
 0x6d8   : > { %v2606_v15 = vrot.slane %v2548_v57, %v5896_v1 }
 0x6dd   : > { %v3500_v3 = vpop.permute.xlu0 %3499 }
 0x6de   : > { %v2551_v46 = vpop.permute.xlu1 %2550 }
 0x6df   : > { %v2610_v27 = vrot.slane %v2551_v46, %v5887_v13 }
 0x6e1   : > { %v3506_v26 = vpop.permute.xlu0 %3505  ;;  %v2611_v46 = vsel %vm2339_vm4, %v2610_v27, %v2606_v15  ;;  %v3525_v15 = vrot.slane %v3500_v3, %v5896_v1 }
 0x6e2   : > { %v2554_v14 = vpop.permute.xlu1 %2553 }
 0x6e3   : > { %v2615_v16 = vrot.slane %v2554_v14, %v5896_v1  ;;  %v2648_v14 = vsel %vm2404_vm5, %v2593_v9, %v2584_v33 }
 0x6e5   : > { %v2620_v41 = vsel %vm2339_vm4, %v2619_v8, %v2615_v16  ;;  %v3509_v60 = vpop.permute.xlu0 %3508 }
 0x6e6   : > { %v2560_v58 = vpop.permute.xlu1 %2559  ;;  %v3537_v33 = vrot.slane %v3509_v60, %v5896_v1 }
 0x6e7   : > { %v2624_v2 = vrot.slane %v2560_v58, %v5896_v1 }
 0x6ea   : > { %v2563_v36 = vpop.permute.xlu1 %2562 }
 0x6eb   : > { %v2628_v43 = vrot.slane %v2563_v36, %v5887_v13  ;;  %v2649_v36 = vsel %vm2406_vm6, %v2602_v49, %v2648_v14 }
 0x6ec   : > { %v2650_v40 = vsel %vm2408_vm7, %v2611_v46, %v2649_v36 }
 0x6ed   : > { %v2629_v17 = vsel %vm2339_vm4, %v2628_v43, %v2624_v2  ;;  %v2651_v57 = vsel %vm2410_vm8, %v2620_v41, %v2650_v40  ;;  %v3515_v43 = vpop.permute.xlu0 %3514 }
 0x6ee   : > { %v2566_v7 = vpop.permute.xlu1 %2565  ;;  %v2652_v42 = vsel %vm2412_vm9, %v2629_v17, %v2651_v57  ;;  %v3545_v17 = vrot.slane %v3515_v43, %v5896_v1 }
 0x6ef   : > { %v2633_v50 = vrot.slane %v2566_v7, %v5896_v1  ;;  %v3533_v7 = vrot.slane %v3506_v26, %v5896_v1 }
 0x6f1   : > { %v2638_v31 = vsel %vm2339_vm4, %v2637_v30, %v2633_v50  ;;  %v3521_v3 = vpop.permute.xlu0 %3520 }
 0x6f2   : > { %v2575_v27 = vpop.permute.xlu1 %2574  ;;  %v2653_v16 = vsel %vm2414_vm10, %v2638_v31, %v2652_v42  ;;  %v3553_v31 = vrot.slane %v3521_v3, %v5896_v1 }
 0x6f3   : > { %v2646_v9 = vrot.slane %v2575_v27, %v5887_v13 }
 0x6f5   : > { %v2647_v8 = vsel %vm2339_vm4, %v2646_v9, %v2642_v37 }
 0x6f6   : > { %v3503_v58 = vpop.permute.xlu1 %3502  ;;  %v2654_v2 = vsel %vm2416_vm11, %v2647_v8, %v2653_v16 }
 0x6f7   : > { %v3529_v49 = vrot.slane %v3503_v58, %v5896_v1  ;;  %v2656_v63 = vsel %vm2419_vm3, %v2654_v2, 0.0 }
 0x6f8   : > { %2657 = vadd.xlane.f32.xlu1 %v2656_v63 }
 0x6f9   : > { %v3554_v46 = vsel %vm2404_vm5, %v3529_v49, %v3525_v15 }
 0x6fa   : > { %v3555_v50 = vsel %vm2406_vm6, %v3533_v7, %v3554_v46  ;;  %v3512_v14 = vpop.permute.xlu1 %3511 }
 0x6fb   : > { %v3541_v30 = vrot.slane %v3512_v14, %v5896_v1  ;;  %v3556_v41 = vsel %vm2408_vm7, %v3537_v33, %v3555_v50 }
 0x6fd   : > { %v3557_v36 = vsel %vm2410_vm8, %v3541_v30, %v3556_v41 }
 0x6fe   : > { %v3518_v40 = vpop.permute.xlu1 %3517  ;;  %v3558_v60 = vsel %vm2412_vm9, %v3545_v17, %v3557_v36 }
 0x6ff   : > { %v3549_v26 = vrot.slane %v3518_v40, %v5896_v1 }
 0x701   : > { %v3559_v27 = vsel %vm2414_vm10, %v3549_v26, %v3558_v60 }
 0x702   : > { %v3560_v37 = vsel %vm2416_vm11, %v3553_v31, %v3559_v27 }
 0x703   : > { %v3562_v57 = vsel %vm1718_vm2, %v3560_v37, 0.0 }
 0x704   : > { %3563 = vadd.xlane.f32.xlu0 %v3562_v57 }
 0x785   : > { %v2658_v9 = vpop.xlane.xlu1 %2657 }
 0x786   : > { %v2663_v42 = vrot.slane %v2658_v9, %v5552_v35  ;;  %v2667_v8 = vrot.slane %v2658_v9, %v5515_v55  ;;  %v2671_v16 = vrot.slane %v2658_v9, %v6016_v45  ;;  %v2675_v58 = vrot.slane %v2658_v9, %v6036_v4 }
 0x787   : > { %v2679_v15 = vrot.slane %v2658_v9, %v6010_v20  ;;  %v2683_v7 = vrot.slane %v2658_v9, %v6059_v12  ;;  %v2687_v14 = vrot.slane %v2658_v9, %v6019_v39  ;;  %v2691_v3 = vrot.slane %v2658_v9, %v6026_v25 }
 0x788   : > { %4685 = vrcp.f32 %v2663_v42 }
 0x789   : > { %4687 = vrcp.f32 %v2667_v8 }
 0x78a   : > { %4689 = vrcp.f32 %v2671_v16 }
 0x78b   : > { %4691 = vrcp.f32 %v2675_v58 }
 0x78c   : > { %4693 = vrcp.f32 %v2679_v15 }
 0x78d   : > { %4695 = vrcp.f32 %v2683_v7 }
 0x78e   : > { %4697 = vrcp.f32 %v2687_v14 }
 0x78f   : > { %4699 = vrcp.f32 %v2691_v3 }
 0x791   : > { %v3564_v41 = vpop.xlane.xlu0 %3563 }
 0x792   : > { %v4686_v2 = vpop.eup %4685  ;;  %v3573_v17 = vrot.slane %v3564_v41, %v5515_v55 }
 0x793   : > { %v2702_v43 = vmul.f32 %v4686_v2, %v6050_v18  ;;  %v2701_v49 = vmul.f32 %v4686_v2, %v6048_v48  ;;  %v4688_v63 = vpop.eup %4687 }
 0x794   : > { %v2705_v33 = vmul.f32 %v4688_v63, %v6064_v54  ;;  %v2704_v46 = vmul.f32 %v4688_v63, %v6055_v51  ;;  %v4690_v50 = vpop.eup %4689  ;;  %4701 = vrcp.f32 %v3573_v17 }
 0x795   : > { %2731 = vperm.xlu1 %4500, %v2702_v43   ;;  %2726 = vperm.xlu0 %4499, %v2701_v49   ;;  %v2707_v18 = vmul.f32 %v4690_v50, %v6081_v28  ;;  %v2708_v48 = vmul.f32 %v4690_v50, %v6091_v11  ;;  %v4692_v30 = vpop.eup %4691  ;;  %v3569_v28 = vrot.slane %v3564_v41, %v5552_v35  ;;  %v6626_v43 = vmax.f32 %v5399_v56, 0.0 }
 0x796   : > { %v2710_v54 = vmul.f32 %v4692_v30, %v6101_v32  ;;  %v2711_v51 = vmul.f32 %v4692_v30, %v6109_v34  ;;  %v4694_v36 = vpop.eup %4693  ;;  %v3581_v32 = vrot.slane %v3564_v41, %v6036_v4  ;;  %v3577_v34 = vrot.slane %v3564_v41, %v6016_v45 }
 0x797   : > { %v2713_v11 = vmul.f32 %v4694_v36, %v6119_v21  ;;  %v2714_v40 = vmul.f32 %v4694_v36, %v6070_v6  ;;  %v4696_v26 = vpop.eup %4695  ;;  %4703 = vrcp.f32 %v3569_v28  ;;  %v3589_v35 = vrot.slane %v3564_v41, %v6059_v12 }
 0x798   : > { %v2716_v31 = vmul.f32 %v4696_v26, %v6128_v0  ;;  %v2717_v55 = vmul.f32 %v4696_v26, %v6137_v47  ;;  %v4698_v60 = vpop.eup %4697  ;;  %4705 = vrcp.f32 %v3581_v32  ;;  %v3585_v6 = vrot.slane %v3564_v41, %v6010_v20  ;;  %v6263_v32 = vld [vmem:[%s5362_s18] sm:$0xff]  }
 0x799   : > { %2741 = vperm.xlu1 %4500, %v2705_v33   ;;  %2736 = vperm.xlu0 %4499, %v2704_v46   ;;  %4707 = vrcp.f32 %v3577_v34  ;;  %v2720_v21 = vmul.f32 %v4698_v60, %v6083_v10  ;;  %v2719_v4 = vmul.f32 %v4698_v60, %v6144_v53  ;;  %v4700_v27 = vpop.eup %4699  ;;  %v3597_v45 = vrot.slane %v3564_v41, %v6026_v25  ;;  %v6628_v46 = vld [vmem:[#allocation25_spill] sm:$0xff]  ;;  %v6634_v60 = vld [vmem:[#allocation28_spill] sm:$0xff] }
 0x79a   : > { %4709 = vrcp.f32 %v3589_v35  ;;  %v3593_v0 = vrot.slane %v3564_v41, %v6019_v39  ;;  %v2722_v37 = vmul.f32 %v4700_v27, %v6093_v61  ;;  %v2723_v12 = vmul.f32 %v4700_v27, %v6148_v44  ;;  %v6630_v41 = vld [vmem:[#allocation26_spill] sm:$0xff] }
 0x79b   : > { %4711 = vrcp.f32 %v3585_v6  ;;  %v6627_v33 = vmax.f32 %v5407_v62, 0.0  ;;  %v6631_v3 = vmax.f32 %v6630_v41, 0.0  ;;  %v894_v34 = vunpack.c.l.bf16 %v6263_v32 }
 0x79c   : > { %4713 = vrcp.f32 %v3597_v45  ;;  %v6635_v35 = vmax.f32 %v6634_v60, 0.0 }
 0x79d   : > { %2746 = vperm.xlu1 %4500, %v2707_v18   ;;  %2751 = vperm.xlu0 %4499, %v2708_v48   ;;  %4715 = vrcp.f32 %v3593_v0  ;;  %v6636_v0 = vld [vmem:[#allocation29_spill] sm:$0xff] }
 0x79e   : > { %v4702_v47 = vpop.eup %4701 }
 0x79f   : > { %v3609_v10 = vmul.f32 %v4702_v47, %v6151_v29  ;;  %v6637_v47 = vmax.f32 %v6636_v0, 0.0 }
 0x7a1   : > { %2756 = vperm.xlu1 %4500, %v2710_v54   ;;  %2761 = vperm.xlu0 %4499, %v2711_v51   ;;  %v4704_v57 = vpop.eup %4703  ;;  %v6632_v54 = vld [vmem:[#allocation27_spill] sm:$0xff] }
 0x7a2   : > { %v4706_v20 = vpop.eup %4705  ;;  %v3607_v53 = vmul.f32 %v4704_v57, %v6107_v24  ;;  %v6633_v51 = vmax.f32 %v6632_v54, 0.0 }
 0x7a3   : > { %v4708_v9 = vpop.eup %4707  ;;  %v3613_v39 = vmul.f32 %v4706_v20, %v6126_v5 }
 0x7a4   : > { %v4710_v25 = vpop.eup %4709  ;;  %v3611_v61 = vmul.f32 %v4708_v9, %v6117_v22  ;;  %v6625_v22 = vmax.f32 %v5402_v59, 0.0 }
 0x7a5   : > { %2766 = vperm.xlu1 %4500, %v2713_v11   ;;  %2771 = vperm.xlu0 %4499, %v2714_v40   ;;  %v4712_v42 = vpop.eup %4711  ;;  %v3617_v8 = vmul.f32 %v4710_v25, %v6135_v52 }
 0x7a6   : > { %v4714_v44 = vpop.eup %4713  ;;  %v3615_v16 = vmul.f32 %v4712_v42, %v6154_v23 }
 0x7a7   : > { %v4716_v58 = vpop.eup %4715  ;;  %v3621_v24 = vmul.f32 %v4714_v44, %v6142_v38 }
 0x7a8   : > { %v3619_v29 = vmul.f32 %v4716_v58, %v6157_v19  ;;  %v6629_v19 = vmax.f32 %v6628_v46, 0.0 }
 0x7a9   : > { %2776 = vperm.xlu1 %4500, %v2716_v31   ;;  %2781 = vperm.xlu0 %4499, %v2717_v55  }
 0x7ad   : > { %2791 = vperm.xlu1 %4500, %v2720_v21   ;;  %2786 = vperm.xlu0 %4499, %v2719_v4   ;;  %v895_v21 = vunpack.c.h.bf16 %v6263_v32 }
 0x7b1   : > { %2796 = vperm.xlu1 %4500, %v2722_v37   ;;  %2801 = vperm.xlu0 %4499, %v2723_v12  }
 0x7b5   : > { %3629 = vperm.xlu0 %4499, %v3609_v10   ;;  %3624 = vperm.xlu1 %4500, %v3607_v53   ;;  %v6276_v10 = vld [vmem:[%s5362_s18 + $0x8] sm:$0xff]  }
 0x7b6   : > { %v896_v53 = vunpack.c.l.bf16 %v6276_v10  ;;  %v897_v44 = vunpack.c.h.bf16 %v6276_v10 }
 0x7b9   : > { %3639 = vperm.xlu0 %4499, %v3613_v39   ;;  %3634 = vperm.xlu1 %4500, %v3611_v61  }
 0x7bd   : > { %3649 = vperm.xlu0 %4499, %v3617_v8   ;;  %3644 = vperm.xlu1 %4500, %v3615_v16  }
 0x7c1   : > { %3659 = vperm.xlu0 %4499, %v3621_v24   ;;  %3654 = vperm.xlu1 %4500, %v3619_v29   ;;  %v6638_v24 = vld [vmem:[#allocation30_spill] sm:$0xff] }
 0x7c2   : > { %v6639_v29 = vmax.f32 %v6638_v24, 0.0 }
 0x814   : > { %v2732_v5 = vpop.permute.xlu1 %2731  ;;  %v2727_v2 = vpop.permute.xlu0 %2726 }
 0x815   : > { %v2805_v15 = vmul.f32 %v2732_v5, %v6625_v22  ;;  %v2804_v49 = vmul.f32 %v2727_v2, %v6626_v43  ;;  %v2900_v12 = vrot.slane %v2732_v5, %v5887_v13  ;;  %v2896_v57 = vrot.slane %v2727_v2, %v5896_v1  ;;  %v6640_v43 = vld [vmem:[#allocation31_spill] sm:$0xff] }
 0x817   : > { %v2820_v52 = vadd.f32 %v2805_v15, %v2804_v49  ;;  %v6641_v49 = vmax.f32 %v6640_v43, 0.0 }
 0x818   : > { %v2742_v63 = vpop.permute.xlu1 %2741  ;;  %v2737_v23 = vpop.permute.xlu0 %2736 }
 0x819   : > { %v2821_v7 = vrot.slane %v2820_v52, 4  ;;  %v2807_v38 = vmul.f32 %v2742_v63, %v6627_v33  ;;  %v2806_v50 = vmul.f32 %v2737_v23, %v6629_v19  ;;  %v2909_v28 = vrot.slane %v2742_v63, %v5887_v13 }
 0x81a   : > { %v2905_v62 = vrot.slane %v2737_v23, %v5896_v1  ;;  %v2901_v63 = vsel %vm2339_vm4, %v2900_v12, %v2896_v57 }
 0x81b   : > { %v2827_v14 = vadd.f32 %v2807_v38, %v2806_v50  ;;  %v2822_v30 = vadd.f32 %v2821_v7, %v2820_v52  ;;  %v6290_v7 = vld [vmem:[%s5362_s18 + $0x10] sm:$0xff]  }
 0x81c   : > { %v2747_v18 = vpop.permute.xlu1 %2746  ;;  %v2752_v48 = vpop.permute.xlu0 %2751  ;;  %v2910_v9 = vsel %vm2339_vm4, %v2909_v28, %v2905_v62  ;;  %v898_v33 = vunpack.c.l.bf16 %v6290_v7  ;;  %v899_v38 = vunpack.c.h.bf16 %v6290_v7  ;;  %v6644_v28 = vld [vmem:[#allocation33_spill] sm:$0xff] }
 0x81d   : > { %v2828_v59 = vrot.slane %v2827_v14, 4  ;;  %v2808_v56 = vmul.f32 %v2747_v18, %v6631_v3  ;;  %v2809_v36 = vmul.f32 %v2752_v48, %v6633_v51  ;;  %v2823_v31 = vrot.slane %v2822_v30, 2  ;;  %v6642_v3 = vld [vmem:[#allocation32_spill] sm:$0xff] }
 0x81e   : > { %v2914_v4 = vrot.slane %v2747_v18, %v5896_v1  ;;  %v2918_v45 = vrot.slane %v2752_v48, %v5887_v13  ;;  %v2965_v46 = vsel %vm2404_vm5, %v2910_v9, %v2901_v63  ;;  %v6645_v62 = vmax.f32 %v6644_v28, 0.0  ;;  %v6648_v9 = vld [vmem:[#allocation34_spill] sm:$0xff] }
 0x81f   : > { %v2829_v17 = vadd.f32 %v2828_v59, %v2827_v14  ;;  %v2834_v11 = vadd.f32 %v2809_v36, %v2808_v56  ;;  %v2824_v8 = vadd.f32 %v2823_v31, %v2822_v30  ;;  %v6643_v56 = vmax.f32 %v6642_v3, 0.0  ;;  %v6652_v3 = vld [vmem:[#allocation37_spill] sm:$0xff] }
 0x820   : > { %v2757_v40 = vpop.permute.xlu1 %2756  ;;  %v2762_v26 = vpop.permute.xlu0 %2761  ;;  %v2919_v22 = vsel %vm2339_vm4, %v2918_v45, %v2914_v4 }
 0x821   : > { %v2830_v55 = vrot.slane %v2829_v17, 2  ;;  %v2810_v6 = vmul.f32 %v2757_v40, %v6635_v35  ;;  %v2835_v27 = vrot.slane %v2834_v11, 4  ;;  %v2811_v37 = vmul.f32 %v2762_v26, %v6637_v47  ;;  %v6646_v47 = vld [vmem:[#allocation35_spill] sm:$0xff] }
 0x822   : > { %v2923_v16 = vrot.slane %v2757_v40, %v5896_v1  ;;  %v2927_v58 = vrot.slane %v2762_v26, %v5887_v13  ;;  %v2825_v30 = vrot.slane %v2824_v8, 1  ;;  %v2966_v59 = vsel %vm2406_vm6, %v2919_v22, %v2965_v46 }
 0x823   : > { %v2831_v20 = vadd.f32 %v2830_v55, %v2829_v17  ;;  %v2836_v25 = vadd.f32 %v2835_v27, %v2834_v11  ;;  %v2841_v39 = vadd.f32 %v2811_v37, %v2810_v6  ;;  %v6647_v37 = vmax.f32 %v6646_v47, 0.0 }
 0x824   : > { %v2767_v61 = vpop.permute.xlu1 %2766  ;;  %v2772_v42 = vpop.permute.xlu0 %2771  ;;  %v2928_v41 = vsel %vm2339_vm4, %v2927_v58, %v2923_v16  ;;  %v2826_v0 = vadd.f32 %v2825_v30, %v2824_v8 }
 0x825   : > { %v2812_v5 = vmul.f32 %v2767_v61, %v6639_v29  ;;  %v2837_v2 = vrot.slane %v2836_v25, 2  ;;  %v2842_v15 = vrot.slane %v2841_v39, 4  ;;  %v2813_v52 = vmul.f32 %v2772_v42, %v6641_v49 }
 0x826   : > { %v2832_v23 = vrot.slane %v2831_v20, 1  ;;  %v2932_v36 = vrot.slane %v2767_v61, %v5896_v1  ;;  %v2936_v31 = vrot.slane %v2772_v42, %v5887_v13  ;;  %v2967_v61 = vsel %vm2408_vm7, %v2928_v41, %v2966_v59 }
 0x827   : > { %v2838_v19 = vadd.f32 %v2837_v2, %v2836_v25  ;;  %v2843_v50 = vadd.f32 %v2842_v15, %v2841_v39  ;;  %v2848_v14 = vadd.f32 %v2813_v52, %v2812_v5 }
 0x828   : > { %v2777_v18 = vpop.permute.xlu1 %2776  ;;  %v2782_v48 = vpop.permute.xlu0 %2781  ;;  %v2833_v40 = vadd.f32 %v2832_v23, %v2831_v20  ;;  %v6649_v20 = vmax.f32 %v6648_v9, 0.0  ;;  %v2937_v24 = vsel %vm2339_vm4, %v2936_v31, %v2932_v36  ;;  %v6650_v23 = vld [vmem:[#allocation36_spill] sm:$0xff]  ;;  %v6346_v9 = vld [vmem:[%s5362_s18 + $0x18] sm:$0xff]   ;;  %s4061_s18 = sshll.u32 %s6370_s30, 3  ;;  %s5017_s30 = smov [#allocation13]  }
 0x829   : > { %v2814_v54 = vmul.f32 %v2777_v18, %v6643_v56  ;;  %v2844_v51 = vrot.slane %v2843_v50, 2  ;;  %v2849_v17 = vrot.slane %v2848_v14, 4  ;;  %v2815_v11 = vmul.f32 %v2782_v48, %v6645_v62  ;;  %s628_s15 = scalar_lea.vmem %s6654_s19, %s4061_s18  ;;  %s4869_s18 = sshll.u32 %s5017_s30, 4  ;;  %s4870_s18 = int_to_ptr.vmem [resolvable:$false] %s4869_s18 }
 0x82a   : > { %v2839_v26 = vrot.slane %v2838_v19, 1  ;;  %v2941_v55 = vrot.slane %v2777_v18, %v5896_v1  ;;  %v2945_v4 = vrot.slane %v2782_v48, %v5887_v13  ;;  %v2884_v58 = vsel %vm2404_vm5, %v2833_v40, %v2826_v0  ;;  %s4871_s2 = scalar_lea.vmem %s4870_s18, 256  ;;  %p4872_p6 = scmp.lt.s32.totalorder %s6401_s13, %s4870_s18 }
 0x82b   : > { %v2845_v60 = vadd.f32 %v2844_v51, %v2843_v50  ;;  %v2850_v35 = vadd.f32 %v2849_v17, %v2848_v14  ;;  %v2855_v6 = vadd.f32 %v2815_v11, %v2814_v54  ;;  %v6651_v46 = vmax.f32 %v6650_v23, 0.0  ;;  %p4873_p10 = scmp.lt.s32.totalorder %s4871_s2, %s4865_s14 }
 0x82c   : > { %v2792_v27 = vpop.permute.xlu1 %2791  ;;  %v2787_v45 = vpop.permute.xlu0 %2786  ;;  %v2840_v5 = vadd.f32 %v2839_v26, %v2838_v19  ;;  %v2946_v15 = vsel %vm2339_vm4, %v2945_v4, %v2941_v55  ;;  %v2968_v19 = vsel %vm2410_vm8, %v2937_v24, %v2967_v61  ;;  %v6653_v56 = vmax.f32 %v6652_v3, 0.0 }
 0x82d   : > { %v2817_v12 = vmul.f32 %v2792_v27, %v6647_v37  ;;  %v2954_v57 = vrot.slane %v2792_v27, %v5887_v13  ;;  %v2816_v25 = vmul.f32 %v2787_v45, %v6649_v20  ;;  %v2846_v39 = vrot.slane %v2845_v60, 1  ;;  %p4874_p3 = por %p4873_p10, %p4872_p6 }
 0x82e   : > { %v2851_v42 = vrot.slane %v2850_v35, 2  ;;  %v2856_v16 = vrot.slane %v2855_v6, 4  ;;  %v2950_v8 = vrot.slane %v2787_v45, %v5896_v1  ;;  %v2969_v59 = vsel %vm2412_vm9, %v2946_v15, %v2968_v19 }
 0x82f   : > { %v2862_v29 = vadd.f32 %v2817_v12, %v2816_v25  ;;  %v2847_v18 = vadd.f32 %v2846_v39, %v2845_v60  ;;  %v2885_v36 = vsel %vm2406_vm6, %v2840_v5, %v2884_v58  ;;  %v900_v20 = vunpack.c.l.bf16 %v6346_v9  ;;  %p4875_p9 = pnand %p4874_p3, %p4868_p8 }
 0x830   : > { %v2852_v2 = vadd.f32 %v2851_v42, %v2850_v35  ;;  %v2857_v22 = vadd.f32 %v2856_v16, %v2855_v6  ;;  %v2797_v43 = vpop.permute.xlu1 %2796  ;;  %v2802_v49 = vpop.permute.xlu0 %2801  ;;  %v2955_v63 = vsel %vm2339_vm4, %v2954_v57, %v2950_v8  ;;  %v901_v25 = vunpack.c.h.bf16 %v6346_v9 }
 0x831   : > { %v2863_v52 = vrot.slane %v2862_v29, 4  ;;  %v2818_v50 = vmul.f32 %v2797_v43, %v6651_v46  ;;  %v2959_v14 = vrot.slane %v2797_v43, %v5896_v1  ;;  %v2819_v54 = vmul.f32 %v2802_v49, %v6653_v56 }
 0x832   : > { %v2853_v48 = vrot.slane %v2852_v2, 1  ;;  %v2858_v30 = vrot.slane %v2857_v22, 2  ;;  %v2963_v51 = vrot.slane %v2802_v49, %v5887_v13  ;;  %v2970_v62 = vsel %vm2414_vm10, %v2955_v63, %v2969_v59 }
 0x833   : > { %v2864_v41 = vadd.f32 %v2863_v52, %v2862_v29  ;;  %v2869_v31 = vadd.f32 %v2819_v54, %v2818_v50  ;;  %v2886_v13 = vsel %vm2408_vm7, %v2847_v18, %v2885_v36 }
 0x834   : > { %v2854_v17 = vadd.f32 %v2853_v48, %v2852_v2  ;;  %v2859_v28 = vadd.f32 %v2858_v30, %v2857_v22  ;;  %v3625_v11 = vpop.permute.xlu1 %3624  ;;  %v3630_v40 = vpop.permute.xlu0 %3629  ;;  %v2964_v55 = vsel %vm2339_vm4, %v2963_v51, %v2959_v14 }
 0x835   : > { %v2865_v26 = vrot.slane %v2864_v41, 2  ;;  %v3662_v60 = vmul.f32 %v3625_v11, %v894_v34  ;;  %v2971_v6 = vsel %vm2416_vm11, %v2964_v55, %v2970_v62  ;;  %v3738_v4 = vrot.slane %v3625_v11, %v5896_v1 }
 0x836   : > { %v2860_v35 = vrot.slane %v2859_v28, 1  ;;  %v2870_v45 = vrot.slane %v2869_v31, 4  ;;  %v3663_v47 = vmul.f32 %v3630_v40, %v895_v21  ;;  %2973 = vst.msk [vmem:[%s616_s28] sm:$0xff] %vm2419_vm3, %v2971_v6  ;;  %v6342_v37 = vsel %vm2410_vm8, %v2854_v17, %v2886_v13 }
 0x837   : > { %v2866_v27 = vadd.f32 %v2865_v26, %v2864_v41  ;;  %v3670_v0 = vrot.slane %v3662_v60, 4  ;;  %v3742_v34 = vrot.slane %v3630_v40, %v5896_v1 }
 0x838   : > { %v3635_v12 = vpop.permute.xlu1 %3634  ;;  %v3640_v57 = vpop.permute.xlu0 %3639  ;;  %v6350_v39 = vadd.f32 %v2860_v35, %v2859_v28  ;;  %v2871_v32 = vadd.f32 %v2870_v45, %v2869_v31  ;;  %v3676_v61 = vrot.slane %v3663_v47, 4 }
 0x839   : > { %v3671_v21 = vadd.f32 %v3670_v0, %v3662_v60  ;;  %v2867_v42 = vrot.slane %v2866_v27, 1  ;;  %v3664_v16 = vmul.f32 %v3635_v12, %v896_v53  ;;  %v3746_v58 = vrot.slane %v3635_v12, %v5896_v1 }
 0x83a   : > { %v3665_v24 = vmul.f32 %v3640_v57, %v897_v44  ;;  %v2872_v29 = vrot.slane %v2871_v32, 2  ;;  %v3677_v5 = vadd.f32 %v3676_v61, %v3663_v47  ;;  %v3767_v2 = vsel %vm2404_vm5, %v3742_v34, %v3738_v4 }
 0x83b   : > { %v3672_v8 = vrot.slane %v3671_v21, 2  ;;  %v3682_v22 = vrot.slane %v3664_v16, 4  ;;  %v3768_v15 = vsel %vm2406_vm6, %v3746_v58, %v3767_v2  ;;  %v3750_v49 = vrot.slane %v3640_v57, %v5896_v1 }
 0x83c   : > { %v3688_v43 = vrot.slane %v3665_v24, 4  ;;  %v3645_v52 = vpop.permute.xlu1 %3644  ;;  %v2873_v63 = vadd.f32 %v2872_v29, %v2871_v32  ;;  %v3678_v23 = vrot.slane %v3677_v5, 2  ;;  %v3650_v44 = vpop.permute.xlu0 %3649  ;;  %v2868_v46 = vadd.f32 %v2867_v42, %v2866_v27 }
 0x83d   : > { %v3673_v53 = vadd.f32 %v3672_v8, %v3671_v21  ;;  %v3666_v10 = vmul.f32 %v3645_v52, %v898_v33  ;;  %v3683_v50 = vadd.f32 %v3682_v22, %v3664_v16  ;;  %v3754_v18 = vrot.slane %v3645_v52, %v5896_v1 }
 0x83e   : > { %v3689_v14 = vadd.f32 %v3688_v43, %v3665_v24  ;;  %v3679_v19 = vadd.f32 %v3678_v23, %v3677_v5  ;;  %v3769_v30 = vsel %vm2408_vm7, %v3750_v49, %v3768_v15  ;;  %v2874_v41 = vrot.slane %v2873_v63, 1 }
 0x83f   : > { %v3674_v48 = vrot.slane %v3673_v53, 1  ;;  %v3694_v59 = vrot.slane %v3666_v10, 4  ;;  %v3684_v3 = vrot.slane %v3683_v50, 2  ;;  %v3667_v54 = vmul.f32 %v3650_v44, %v899_v38 }
 0x840   : > { %v3690_v56 = vrot.slane %v3689_v14, 2  ;;  %v3655_v51 = vpop.permute.xlu1 %3654  ;;  %v3680_v36 = vrot.slane %v3679_v19, 1  ;;  %v3770_v28 = vsel %vm2410_vm8, %v3754_v18, %v3769_v30  ;;  %v3758_v26 = vrot.slane %v3650_v44, %v5896_v1  ;;  %v3660_v38 = vpop.permute.xlu0 %3659 }
 0x841   : > { %v3675_v33 = vadd.f32 %v3674_v48, %v3673_v53  ;;  %v3695_v17 = vadd.f32 %v3694_v59, %v3666_v10  ;;  %v3685_v62 = vadd.f32 %v3684_v3, %v3683_v50  ;;  %v3700_v40 = vrot.slane %v3667_v54, 4 }
 0x842   : > { %v3691_v11 = vadd.f32 %v3690_v56, %v3689_v14  ;;  %v3681_v31 = vadd.f32 %v3680_v36, %v3679_v19  ;;  %v3668_v60 = vmul.f32 %v3655_v51, %v900_v20  ;;  %v3762_v7 = vrot.slane %v3655_v51, %v5896_v1 }
 0x843   : > { %v3696_v55 = vrot.slane %v3695_v17, 2  ;;  %v2875_v13 = vadd.f32 %v2874_v41, %v2873_v63  ;;  %v3686_v35 = vrot.slane %v3685_v62, 1  ;;  %v3701_v4 = vadd.f32 %v3700_v40, %v3667_v54 }
 0x844   : > { %v3692_v6 = vrot.slane %v3691_v11, 1  ;;  %v3726_v27 = vsel %vm2404_vm5, %v3681_v31, %v3675_v33  ;;  %v3771_v0 = vsel %vm2412_vm9, %v3758_v26, %v3770_v28  ;;  %v3706_v47 = vrot.slane %v3668_v60, 4 }
 0x845   : > { %v3697_v45 = vadd.f32 %v3696_v55, %v3695_v17  ;;  %v3687_v34 = vadd.f32 %v3686_v35, %v3685_v62  ;;  %v3702_v12 = vrot.slane %v3701_v4, 2  ;;  %v3772_v57 = vsel %vm2414_vm10, %v3762_v7, %v3771_v0 }
 0x846   : > { %v3669_v20 = vmul.f32 %v3660_v38, %v901_v25  ;;  %v3693_v32 = vadd.f32 %v3692_v6, %v3691_v11  ;;  %v3707_v61 = vadd.f32 %v3706_v47, %v3668_v60  ;;  %v3766_v42 = vrot.slane %v3660_v38, %v5896_v1 }
 0x847   : > { %v3698_v21 = vrot.slane %v3697_v45, 1  ;;  %v3727_v16 = vsel %vm2406_vm6, %v3687_v34, %v3726_v27  ;;  %v3703_v58 = vadd.f32 %v3702_v12, %v3701_v4  ;;  %v2888_v9 = vsel %vm2412_vm9, %v6350_v39, %v6342_v37 }
 0x848   : > { %v3712_v24 = vrot.slane %v3669_v20, 4  ;;  %v3708_v29 = vrot.slane %v3707_v61, 2  ;;  %v3773_v8 = vsel %vm2416_vm11, %v3766_v42, %v3772_v57  ;;  %v2889_v5 = vsel %vm2414_vm10, %v2868_v46, %v2888_v9 }
 0x849   : > { %v3699_v25 = vadd.f32 %v3698_v21, %v3697_v45  ;;  %v3704_v1 = vrot.slane %v3703_v58, 1  ;;  %3775 = vst.msk [vmem:[%s628_s15] sm:$0xff] %vm1718_vm2, %v3773_v8  ;;  %v2890_v37 = vsel %vm2416_vm11, %v2875_v13, %v2889_v5  ;;  %v3728_v22 = vsel %vm2408_vm7, %v3693_v32, %v3727_v16 }
 0x84a   : > { %v3713_v2 = vadd.f32 %v3712_v24, %v3669_v20  ;;  %v3709_v39 = vadd.f32 %v3708_v29, %v3707_v61  ;;  %2892 = vst [vmem:[%s602_s22] sm:$0xff] %v2890_v37 }
 0x84b   : > { %v3705_v15 = vadd.f32 %v3704_v1, %v3703_v58 }
 0x84c   : > { %v3714_v43 = vrot.slane %v3713_v2, 2 }
 0x84d   : > { %4878 = shalt.err (!%p4875_p9)
}
 0x84e   : > { %s4879_s6 = scalar_lea.hbm %s6399_s17, 128  ;;  %s4883_s19 = scalar_lea.hbm %s6655_s20, 256 }
 0x84f   : > { %p4880_p13 = scmp.ne.s32.totalorder %s6399_s17, %s4879_s6  ;;  %p4884_p12 = scmp.lt.u32.totalorder %s6399_s17, %s6655_s20 }
 0x850   : > { %p4885_p1 = scmp.lt.u32.totalorder %s4883_s19, %s4879_s6  ;;  %p4887_p4 = scmp.lt.u32.totalorder %s4879_s6, %s6399_s17 }
 0x851   : > { %p4881_p11 = pnand %p4880_p13, %p5253_p5 }
 0x852   : > { %p4886_p2 = por %p4885_p1, %p4884_p12 }
 0x853   : > { %p4882_p7 = pneg %p4881_p11 }
 0x854   : > { %p4888_p0 = por %p4887_p4, %p4886_p2 }
 0x856   : > { %p4889_p8 = pnand %p4888_p0, %p4882_p7 }
 0x858   : > { %4892 = shalt.err (!%p4889_p8)
}
 0x859   : > { %4416 = dma.vmem_to_hbm [thread:$0]  (%p5253_p5), %s6401_s13, 128, %s6399_s17, %s3777_s9   ;;  %v3729_v49 = vsel %vm2410_vm8, %v3699_v25, %v3728_v22  ;;  %v3710_v52 = vrot.slane %v3709_v39, 1  ;;  %v3715_v63 = vadd.f32 %v3714_v43, %v3713_v2 }
 0x85a   : > { %v3730_v23 = vsel %vm2412_vm9, %v3705_v15, %v3729_v49  ;;  %s609_s12 = scalar_lea.vmem [#allocation14], %s6320_s21  ;;  %s3830_s30 = sshll.u32 %s616_s28, 4  ;;  %s6449_s30 = int_to_ptr.vmem [resolvable:$true] %s3830_s30 }
 0x85b   : > { %v3711_v53 = vadd.f32 %v3710_v52, %v3709_v39  ;;  %v3716_v10 = vrot.slane %v3715_v63, 1  ;;  %s3817_s14 = sshll.u32 %s609_s12, 4  ;;  %s6656_s13 = sld [smem:[#allocation44_spill]]  ;;  %s6440_s14 = int_to_ptr.vmem [resolvable:$true] %s3817_s14 }
 0x85c   : > { %s6657_s22 = sld [smem:[#allocation45_spill]]  ;;  %s6453_s21 = scalar_lea.sflag [#allocation15], %s541_s4 }
 0x85d   : > { %v3731_v44 = vsel %vm2414_vm10, %v3711_v53, %v3730_v23  ;;  %v3717_v46 = vadd.f32 %v3716_v10, %v3715_v63  ;;  %s4893_s28 = scalar_lea.vmem %s6440_s14, 128  ;;  %s5018_s15 = smov [#allocation14]  }
 0x85e   : > { %p4894_p6 = scmp.ne.s32.totalorder %s6440_s14, %s4893_s28  ;;  %s4897_s0 = sshll.u32 %s5018_s15, 4  ;;  %s4898_s0 = int_to_ptr.vmem [resolvable:$false] %s4897_s0 }
 0x85f   : > { %v3732_v50 = vsel %vm2416_vm11, %v3717_v46, %v3731_v44  ;;  %s4899_s18 = scalar_lea.vmem %s4898_s0, 256  ;;  %p4900_p9 = scmp.lt.s32.totalorder %s6440_s14, %s4898_s0 }
 0x860   : > { %3734 = vst [vmem:[%s609_s12] sm:$0xff] %v3732_v50  ;;  %p4895_p10 = pnand %p4894_p6, %p5253_p5  ;;  %p4901_p13 = scmp.lt.s32.totalorder %s4899_s18, %s4893_s28 }
 0x861   : > { %s6438_s17 = scalar_lea.hbm %s6656_s13, %s6382_s26 }
 0x862   : > { %s6658_s25 = smov %s6657_s22  ;;  %s6447_s19 = scalar_lea.hbm %s6657_s22, %s6382_s26 }
 0x863   : > { %p4896_p3 = pneg %p4895_p10  ;;  %p4902_p11 = por %p4901_p13, %p4900_p9 }
 0x865   : > { %p4903_p7 = pnand %p4902_p11, %p4896_p3 }
 0x867   : > { %4906 = shalt.err (!%p4903_p7)
}
 0x868   : > { %s4907_s11 = scalar_lea.hbm %s6438_s17, 128  ;;  %s4911_s12 = scalar_lea.hbm %s6656_s13, 256 }
 0x869   : > { %p4908_p12 = scmp.ne.s32.totalorder %s6438_s17, %s4907_s11  ;;  %p4912_p4 = scmp.lt.u32.totalorder %s6438_s17, %s6656_s13 }
 0x86a   : > { %p4913_p0 = scmp.lt.u32.totalorder %s4911_s12, %s4907_s11  ;;  %p4915_p6 = scmp.lt.u32.totalorder %s4907_s11, %s6438_s17 }
 0x86b   : > { %p4909_p1 = pnand %p4908_p12, %p5253_p5 }
 0x86c   : > { %p4914_p8 = por %p4913_p0, %p4912_p4 }
 0x86d   : > { %p4910_p2 = pneg %p4909_p1 }
 0x86e   : > { %p4916_p10 = por %p4915_p6, %p4914_p8 }
 0x870   : > { %p4917_p3 = pnand %p4916_p10, %p4910_p2 }
 0x872   : > { %4920 = shalt.err (!%p4917_p3)
}
 0x873   : > { %4417 = dma.vmem_to_hbm [thread:$0]  (%p5253_p5), %s6440_s14, 128, %s6438_s17, %s6453_s21  }
 0x874   : > { %s4921_s6 = scalar_lea.vmem %s6449_s30, 128  ;;  %s5019_s22 = smov [#allocation16]  }
 0x875   : > { %p4922_p9 = scmp.ne.s32.totalorder %s6449_s30, %s4921_s6  ;;  %s4925_s28 = sshll.u32 %s5019_s22, 4  ;;  %s4926_s28 = int_to_ptr.vmem [resolvable:$false] %s4925_s28 }
 0x876   : > { %s4927_s15 = scalar_lea.vmem %s4926_s28, 256  ;;  %p4928_p7 = scmp.lt.s32.totalorder %s6449_s30, %s4926_s28 }
 0x877   : > { %p4923_p13 = pnand %p4922_p9, %p5253_p5  ;;  %p4929_p12 = scmp.lt.s32.totalorder %s4927_s15, %s4921_s6 }
 0x879   : > { %p4924_p11 = pneg %p4923_p13  ;;  %p4930_p1 = por %p4929_p12, %p4928_p7 }
 0x87b   : > { %p4931_p2 = pnand %p4930_p1, %p4924_p11 }
 0x87d   : > { %4934 = shalt.err (!%p4931_p2)
}
 0x87e   : > { %s4935_s14 = scalar_lea.hbm %s6447_s19, 128  ;;  %s4939_s18 = scalar_lea.hbm %s6658_s25, 256 }
 0x87f   : > { %p4936_p4 = scmp.ne.s32.totalorder %s6447_s19, %s4935_s14  ;;  %p4940_p6 = scmp.lt.u32.totalorder %s6447_s19, %s6658_s25 }
 0x880   : > { %p4941_p10 = scmp.lt.u32.totalorder %s4939_s18, %s4935_s14  ;;  %p4943_p9 = scmp.lt.u32.totalorder %s4935_s14, %s6447_s19 }
 0x881   : > { %p4937_p0 = pnand %p4936_p4, %p5253_p5 }
 0x882   : > { %p4942_p3 = por %p4941_p10, %p4940_p6 }
 0x883   : > { %p4938_p8 = pneg %p4937_p0 }
 0x884   : > { %p4944_p13 = por %p4943_p9, %p4942_p3 }
 0x886   : > { %p4945_p11 = pnand %p4944_p13, %p4938_p8 }
 0x888   : > { %4948 = shalt.err (!%p4945_p11)
}
 0x889   : > { %4418 = dma.vmem_to_hbm [thread:$0]  (%p5253_p5), %s6449_s30, 128, %s6447_s19, %s6453_s21  }
 0x88a PF: > { %s6659_s26 = sld [smem:[#allocation23_spill]]  ;;  %s6660_s12 = sld [smem:[#allocation24_spill]] }
 0x88b   : > { %p6662_p12 = scmp.ge.s32.totalorder %s5003_s10, 2 }
 0x890   : > { %s3845_s2 = sand.u32 1, %s6659_s26   ;;  %p6661_p7 = scmp.ne.s32.totalorder %s6660_s12, 0 }
 0x891   : > { %s3846_s9 = scalar_lea.sflag [#allocation6], %s3845_s2 }
 0x892   : > { %p4440_p1 = pnand %p6662_p12, %p6661_p7 }
 0x894   : > { %4982 = dma.done.wait (!%p4440_p1), %s3846_s9, 128  }
 0x895   : > { %4984 = vsyncadd (!%p4440_p1), %s3846_s9, 4294967168  ;;  %s6663_s6 = sadd.s32 4294967294, %s5003_s10  }
 0x896   : > { %s3854_s22 = sand.u32 1, %s6663_s6  }
 0x897   : > { %s3855_s28 = scalar_lea.sflag [#allocation15], %s3854_s22 }
 0x898   : > { %4986 = dma.done.wait (!%p4440_p1), %s3855_s28, 256  }
 0x899   : > { %4988 = vsyncadd (!%p4440_p1), %s3855_s28, 4294967040  ;;  %p38_p5 = scmp.ge.s32.totalorder %s5221_s29, 4   ;;  %s6664_s22 = smov %s4995_s23 }
 0x89a   : > { %s6665_s23 = smov %s4999_s24  ;;  %s6666_s24 = smov %s5249_s27 }
 0x89b   : > { %s6667_s10 = smov %s5221_s29  ;;  %40 = sbr.rel (!%p38_p5) target bundleno = 22 (0x16), region = 182 }
 0x8a2   :  { %3876 = vsyncpa [#allocation5], 1 }
 0x8a3   :  { %3878 = vsyncpa [#allocation5 + $0x1], 1 }
 0x8a4   :  { %3879 = vsyncpa [#allocation8], 1 }
 0x8a5   :  { %3881 = vsyncpa [#allocation8 + $0x1], 1 }
 0x8a6   :  { %3882 = vsyncpa [#allocation11], 1 }
 0x8a7   :  { %3883 = vsyncpa [#allocation6], 1 }
 0x8a8   :  { %3885 = vsyncpa [#allocation6 + $0x1], 1 }
 0x8a9   :  { %3886 = vsyncpa [#allocation15], 1 }
 0x8aa   :  { %3888 = vsyncpa [#allocation15 + $0x1], 1 }

</bundles_post_ra>
